<compile_context>
chip_gen: v7x
topology: tpu7x:2x2x1
jax: 0.10.0
libtpu: 0.0.40
codegen_flags: <defaults>
</compile_context>

<pallas_src>
import functools
import math

import jax
import jax.numpy as jnp
from jax import lax
from jax.experimental import pallas as pl
from jax.experimental.pallas import tpu as pltpu


def _default_vmem_limit():
    """Per-generation-safe scoped VMEM limit (v5e/v6e: 128 MiB phys, v7x: 64)."""
    try:
        phys = getattr(pltpu.get_tpu_info(), "vmem_capacity_bytes", None)
        if phys:
            return int(min(96 * 2**20, max(phys // 2, 32 * 2**20)))
    except Exception:
        pass
    return 48 * 2**20


_VMEM_LIMIT_BYTES = _default_vmem_limit()
_NEG_BIG = jnp.float32(-1e30)   # mask value (avoids inf-inf NaN paths)


def _round_up(x, m):
    return ((x + m - 1) // m) * m


def _pick_tile(dim, cap, aligns=(8,)):
    """Largest divisor of `dim` <= cap that is a multiple of one of `aligns`
    (tried in preference order). Falls back to the full extent."""
    cap = min(dim, cap)
    for align in aligns:
        start = cap - cap % align
        for t in range(start, 0, -align):
            if dim % t == 0:
                return t
    return dim


def _heads_per_block(num_heads, head_dim):
    """Smallest head group whose lane width is a multiple of 128."""
    if head_dim % 128 == 0:
        return 1
    hpg = 128 // math.gcd(head_dim, 128)
    if num_heads % hpg == 0:
        return hpg
    return num_heads  # fallback: whole-C block (requires C % 128 == 0)


# ----------------------------------------------------------------------------
# Kernel 1: tiled fused linear layer  y = x @ W + b   (qkv and proj)
# ----------------------------------------------------------------------------
def _linear_kernel(x_ref, w_ref, b_ref, o_ref, acc_ref):
    k = pl.program_id(2)

    @pl.when(k == 0)
    def _():
        acc_ref[...] = jnp.zeros_like(acc_ref)

    acc_ref[...] += jnp.dot(x_ref[...], w_ref[...],
                            preferred_element_type=jnp.float32)

    @pl.when(k == pl.num_programs(2) - 1)
    def _():
        o_ref[...] = (acc_ref[...] + b_ref[...]).astype(o_ref.dtype)


def linear(x, w, b, *, out_dtype=None, tm_cap=512, tn_cap=768, tk_cap=512):
    """x: (M, K), w: (K, N), b: (N,) -> (M, N); tiled + pipelined."""
    M, K = x.shape
    K2, N = w.shape
    assert K == K2 and b.shape == (N,)
    out_dtype = out_dtype or x.dtype

    # Prefer 256-aligned tiles (full-depth v6e/v7x MXU), then 128 / 8.
    tm = _pick_tile(M, tm_cap, (256, 8))
    tn = _pick_tile(N, tn_cap, (256, 128))
    tk = _pick_tile(K, tk_cap, (256, 128))

    return pl.pallas_call(
        _linear_kernel,
        out_shape=jax.ShapeDtypeStruct((M, N), out_dtype),
        grid_spec=pltpu.PrefetchScalarGridSpec(
            num_scalar_prefetch=0,
            grid=(M // tm, N // tn, K // tk),
            in_specs=[
                pl.BlockSpec((tm, tk), lambda i, j, k: (i, k)),
                pl.BlockSpec((tk, tn), lambda i, j, k: (k, j)),
                pl.BlockSpec((1, tn), lambda i, j, k: (0, j)),
            ],
            out_specs=pl.BlockSpec((tm, tn), lambda i, j, k: (i, j)),
            scratch_shapes=[pltpu.VMEM((tm, tn), jnp.float32)],
        ),
        compiler_params=pltpu.CompilerParams(
            dimension_semantics=("parallel", "parallel", "arbitrary"),
            vmem_limit_bytes=_VMEM_LIMIT_BYTES,
        ),
    )(x, w, b.astype(jnp.float32).reshape(1, N))


# ----------------------------------------------------------------------------
# Kernel 2: flash-style multi-head attention, head (group) on a grid axis
#   input: qkv (B, N_pad, 3C)  (q cols [0,C), k cols [C,2C), v cols [2C,3C))
#   output: (B, N_pad, C)  lane-dense per-head-group slabs
# ----------------------------------------------------------------------------
def _flash_mha_kernel(q_ref, k_ref, v_ref, o_ref, m_sc, l_sc, acc_sc, *,
                      heads_per_block, head_dim, scale, kv_tile, seq_len,
                      mask_kv, approx_recip):
    ki = pl.program_id(3)

    @pl.when(ki == 0)
    def _():
        m_sc[...] = jnp.full_like(m_sc, -jnp.inf)
        l_sc[...] = jnp.zeros_like(l_sc)
        acc_sc[...] = jnp.zeros_like(acc_sc)

    q = q_ref[0]   # (tq,  Cg)
    k = k_ref[0]   # (tkv, Cg)
    v = v_ref[0]   # (tkv, Cg)

    # heads_per_block is 1 when head_dim % 128 == 0 (no sub-128 slices).
    for h in range(heads_per_block):
        lo = h * head_dim
        q_h = q[:, lo:lo + head_dim]
        k_h = k[:, lo:lo + head_dim]
        v_h = v[:, lo:lo + head_dim]

        # (tq, tkv) scores; contract last dims -> no transposed copy of k.
        s = lax.dot_general(q_h, k_h, (((1,), (1,)), ((), ())),
                            preferred_element_type=jnp.float32)
        s = s * scale   # softmax scale applied on the f32 score tile (VPU)

        if mask_kv:
            col = lax.broadcasted_iota(jnp.int32, s.shape, 1) + ki * kv_tile
            s = jnp.where(col < seq_len, s, _NEG_BIG)

        m_prev = m_sc[h]                                        # (tq, 1)
        m_new = jnp.maximum(m_prev, jnp.max(s, axis=-1, keepdims=True))
        alpha = jnp.exp(m_prev - m_new)
        p = jnp.exp(s - m_new)

        l_sc[h] = alpha * l_sc[h] + jnp.sum(p, axis=-1, keepdims=True)
        acc_sc[h] = alpha * acc_sc[h] + jnp.dot(
            p.astype(v_h.dtype), v_h, preferred_element_type=jnp.float32)
        m_sc[h] = m_new

    @pl.when(ki == pl.num_programs(3) - 1)
    def _():
        def _norm(h):
            if approx_recip:
                return acc_sc[h] * pl.reciprocal(l_sc[h], approx=True)
            return acc_sc[h] / l_sc[h]        # exact path (f32 validation)

        if heads_per_block == 1:
            o_ref[0] = _norm(0).astype(o_ref.dtype)
        else:
            o_ref[0] = jnp.concatenate(
                [_norm(h) for h in range(heads_per_block)],
                axis=-1).astype(o_ref.dtype)


def flash_mha(qkv, *, num_heads, head_dim, scale, seq_len, tq, tkv):
    B, n_pad, C3 = qkv.shape
    C = num_heads * head_dim
    assert C3 == 3 * C
    assert n_pad % tq == 0 and n_pad % tkv == 0

    hpg = _heads_per_block(num_heads, head_dim)
    cg = hpg * head_dim                       # lane width per head group
    assert cg % 128 == 0, (
        "head-group lane width must be a multiple of 128 "
        f"(num_heads={num_heads}, head_dim={head_dim})")
    num_groups = num_heads // hpg
    mask_kv = (n_pad != seq_len)
    approx_recip = qkv.dtype != jnp.dtype(jnp.float32)

    kernel = functools.partial(
        _flash_mha_kernel, heads_per_block=hpg, head_dim=head_dim,
        scale=scale, kv_tile=tkv, seq_len=seq_len, mask_kv=mask_kv,
        approx_recip=approx_recip)

    q_spec = pl.BlockSpec((1, tq, cg), lambda b, g, qi, ki: (b, qi, g))
    k_spec = pl.BlockSpec((1, tkv, cg),
                          lambda b, g, qi, ki: (b, ki, num_groups + g))
    v_spec = pl.BlockSpec((1, tkv, cg),
                          lambda b, g, qi, ki: (b, ki, 2 * num_groups + g))
    o_spec = pl.BlockSpec((1, tq, cg), lambda b, g, qi, ki: (b, qi, g))

    return pl.pallas_call(
        kernel,
        out_shape=jax.ShapeDtypeStruct((B, n_pad, C), qkv.dtype),
        grid_spec=pltpu.PrefetchScalarGridSpec(
            num_scalar_prefetch=0,
            grid=(B, num_groups, n_pad // tq, n_pad // tkv),
            in_specs=[q_spec, k_spec, v_spec],
            out_specs=o_spec,
            scratch_shapes=[
                pltpu.VMEM((hpg, tq, 1), jnp.float32),          # m
                pltpu.VMEM((hpg, tq, 1), jnp.float32),          # l
                pltpu.VMEM((hpg, tq, head_dim), jnp.float32),   # acc
            ],
        ),
        compiler_params=pltpu.CompilerParams(
            dimension_semantics=("parallel", "parallel", "parallel",
                                 "arbitrary"),
            vmem_limit_bytes=_VMEM_LIMIT_BYTES,
        ),
    )(qkv, qkv, qkv)


def _seq_tiles(N, *, tq_cap=1024, tkv_cap=256):
    """Pick (tq, tkv, N_pad): tq is the primary knob (K/V HBM traffic ~ N/tq);
    pad N so both axes get aligned, pipelined tiles even for e.g. N=197."""
    n8 = _round_up(N, 8)
    tq = min(tq_cap, n8)
    n_pad = _round_up(N, tq)
    tkv = _pick_tile(n_pad, tkv_cap, (256, 128, 8))
    return tq, tkv, n_pad


# ----------------------------------------------------------------------------
# Full Attention module forward
# ----------------------------------------------------------------------------
def attention_forward(x, params, num_heads, *, compute_dtype=jnp.bfloat16):
    """x: (B, H, W, C) channels-last, matching the PyTorch module."""
    B, H, W, C = x.shape
    assert C % num_heads == 0
    head_dim = C // num_heads
    scale = head_dim ** (-0.5)
    N = H * W
    cd = compute_dtype

    tq, tkv, n_pad = _seq_tiles(N)

    x_seq = x.reshape(B, N, C)
    if n_pad != N:
        x_seq = jnp.pad(x_seq, ((0, 0), (0, n_pad - N), (0, 0)))
    x_flat = x_seq.reshape(B * n_pad, C).astype(cd)

    # qkv projection: (B*n_pad, 3C); bf16 MXU operands, f32 accumulation.
    qkv = linear(x_flat, params["w_qkv"].astype(cd), params["b_qkv"],
                 out_dtype=cd)

    # Flash attention directly on the (B, n_pad, 3C) layout — no head-splitting
    # transposes in HBM (reshape is a free view); heads live on a grid axis.
    o = flash_mha(qkv.reshape(B, n_pad, 3 * C),
                  num_heads=num_heads, head_dim=head_dim, scale=scale,
                  seq_len=N, tq=tq, tkv=tkv)

    # Output projection, cast back to the input dtype inside the kernel.
    out = linear(o.reshape(B * n_pad, C), params["w_proj"].astype(cd),
                 params["b_proj"], out_dtype=x.dtype)
    out = out.reshape(B, n_pad, C)[:, :N]
    return out.reshape(B, H, W, C)


def init_params(key, embed_dim):
    """Deterministic synthetic parameters (same shapes as the PyTorch module,
    linear weights stored pre-transposed as (in, out))."""
    k1, k2, k3, k4 = jax.random.split(key, 4)
    w_qkv = jax.random.normal(k1, (embed_dim, 3 * embed_dim), jnp.float32) * 0.02
    b_qkv = jax.random.normal(k2, (3 * embed_dim,), jnp.float32) * 0.02
    w_proj = jax.random.normal(k3, (embed_dim, embed_dim), jnp.float32) * 0.02
    b_proj = jax.random.normal(k4, (embed_dim,), jnp.float32) * 0.02
    return {"w_qkv": w_qkv, "b_qkv": b_qkv, "w_proj": w_proj, "b_proj": b_proj}


def attention_reference(x, params, num_heads):
    """Pure-JAX mirror of the PyTorch forward (use_rel_pos=False)."""
    B, H, W, C = x.shape
    N = H * W
    hd = C // num_heads
    scale = hd ** (-0.5)
    qkv = x.reshape(B, N, C) @ params["w_qkv"] + params["b_qkv"]
    qkv = qkv.reshape(B, N, 3, num_heads, hd).transpose(2, 0, 3, 1, 4)
    q, k, v = qkv[0], qkv[1], qkv[2]                      # (B, nh, N, hd)
    attn = jax.nn.softmax((q * scale) @ jnp.swapaxes(k, -1, -2), axis=-1)
    o = (attn @ v).transpose(0, 2, 1, 3).reshape(B, N, C)
    out = o @ params["w_proj"] + params["b_proj"]
    return out.reshape(B, H, W, C)


# TODO(synk): use_rel_pos=True path (add_decomposed_rel_pos) not implemented;
# module default is use_rel_pos=False.

if __name__ == "__main__":
    key = jax.random.PRNGKey(0)
    B, H, W, C = 2, 8, 8, 256
    num_heads = 2   # head_dim = 128 -> heads-on-grid fast path

    kx, kp = jax.random.split(key)
    x = jax.random.normal(kx, (B, H, W, C), jnp.float32)
    params = init_params(kp, C)

    # Correctness check against the pure-JAX reference with f32 compute
    # (exact reciprocal on this path).
    ref = attention_reference(x, params, num_heads)
    out_f32 = attention_forward(x, params, num_heads,
                                compute_dtype=jnp.float32)
    out_f32 = jax.block_until_ready(out_f32)
    assert out_f32.shape == (B, H, W, C), out_f32.shape
    max_err = float(jnp.max(jnp.abs(out_f32 - ref)))
    assert max_err < 2e-4, f"max abs error vs reference: {max_err}"

    # Default (bf16 MXU) production path.
    out = attention_forward(x, params, num_heads)
    out = jax.block_until_ready(out)
    assert out.shape == (B, H, W, C), out.shape
    assert bool(jnp.all(jnp.isfinite(out)))
    print("KERNEL_OK")
</pallas_src>

<mosaic_0001>
module attributes {stable_mosaic.version = 11 : i64} {
  func.func @_linear_kernel(%arg0: i32, %arg1: i32, %arg2: i32, %arg3: memref<128x256xf32, #tpu.memory_space<vmem>>, %arg4: memref<256x768xf32, #tpu.memory_space<vmem>>, %arg5: memref<1x768xf32, #tpu.memory_space<vmem>>, %arg6: memref<128x768xf32, #tpu.memory_space<vmem>>, %arg7: memref<128x768xf32, #tpu.memory_space<vmem>>) attributes {dimension_semantics = [#tpu.dimension_semantics<parallel>, #tpu.dimension_semantics<parallel>, #tpu.dimension_semantics<arbitrary>], iteration_bounds = array<i64: 1, 1, 1>, scalar_prefetch = 0 : i64, scratch_operands = 1 : i64, tpu.core_type = #tpu.core_type<tc>, window_params = [{transform_indices = @transform_0, window_bounds = array<i64: 128, 256>}, {transform_indices = @transform_1, window_bounds = array<i64: 256, 768>}, {transform_indices = @transform_2, window_bounds = array<i64: 1, 768>}, {transform_indices = @transform_3, window_bounds = array<i64: 128, 768>}]} {
    %c0_i32 = arith.constant 0 : i32
    %0 = arith.cmpi eq, %arg2, %c0_i32 : i32
    %1 = arith.extui %0 : i1 to i32
    %c0_i32_0 = arith.constant 0 : i32
    %2 = arith.cmpi ne, %1, %c0_i32_0 : i32
    scf.if %2 {
      %cst_10 = arith.constant 0.000000e+00 : f32
      %12 = vector.broadcast %cst_10 : f32 to vector<128x768xf32>
      %c0_11 = arith.constant 0 : index
      %c0_12 = arith.constant 0 : index
      %13 = vector.load %arg7[%c0_11, %c0_12] : memref<128x768xf32, #tpu.memory_space<vmem>>, vector<128x768xf32>
      tpu.vector_store %arg7[%c0_11, %c0_12], %12 {strides = array<i32>} : memref<128x768xf32, #tpu.memory_space<vmem>>, vector<128x768xf32>,
    } else {
    }
    %c0 = arith.constant 0 : index
    %c0_1 = arith.constant 0 : index
    %3 = vector.load %arg7[%c0, %c0_1] : memref<128x768xf32, #tpu.memory_space<vmem>>, vector<128x768xf32>
    %c0_2 = arith.constant 0 : index
    %c0_3 = arith.constant 0 : index
    %4 = vector.load %arg3[%c0_2, %c0_3] : memref<128x256xf32, #tpu.memory_space<vmem>>, vector<128x256xf32>
    %c0_4 = arith.constant 0 : index
    %c0_5 = arith.constant 0 : index
    %5 = vector.load %arg4[%c0_4, %c0_5] : memref<256x768xf32, #tpu.memory_space<vmem>>, vector<256x768xf32>
    %cst = arith.constant dense<0.000000e+00> : vector<128x768xf32>
    %6 = tpu.matmul %4, %5, %cst {dimension_numbers = #tpu.dot_dimension_numbers<[1], [0], [0], [1], [0, 0, 1, 1], [], []>} : vector<128x256xf32>, vector<256x768xf32>, vector<128x768xf32> -> vector<128x768xf32>
    %7 = arith.addf %3, %6 : vector<128x768xf32>
    %c0_6 = arith.constant 0 : index
    %c0_7 = arith.constant 0 : index
    %8 = vector.load %arg7[%c0_6, %c0_7] : memref<128x768xf32, #tpu.memory_space<vmem>>, vector<128x768xf32>
    tpu.vector_store %arg7[%c0_6, %c0_7], %7 {strides = array<i32>} : memref<128x768xf32, #tpu.memory_space<vmem>>, vector<128x768xf32>,
    %c0_i32_8 = arith.constant 0 : i32
    %9 = arith.cmpi eq, %arg2, %c0_i32_8 : i32
    %10 = arith.extui %9 : i1 to i32
    %c0_i32_9 = arith.constant 0 : i32
    %11 = arith.cmpi ne, %10, %c0_i32_9 : i32
    scf.if %11 {
      %c0_10 = arith.constant 0 : index
      %c0_11 = arith.constant 0 : index
      %12 = vector.load %arg7[%c0_10, %c0_11] : memref<128x768xf32, #tpu.memory_space<vmem>>, vector<128x768xf32>
      %c0_12 = arith.constant 0 : index
      %c0_13 = arith.constant 0 : index
      %13 = vector.load %arg5[%c0_12, %c0_13] : memref<1x768xf32, #tpu.memory_space<vmem>>, vector<1x768xf32>
      %14 = vector.broadcast %13 : vector<1x768xf32> to vector<128x768xf32>
      %15 = arith.addf %12, %14 : vector<128x768xf32>
      %c0_14 = arith.constant 0 : index
      %c0_15 = arith.constant 0 : index
      %16 = vector.load %arg6[%c0_14, %c0_15] : memref<128x768xf32, #tpu.memory_space<vmem>>, vector<128x768xf32>
      tpu.vector_store %arg6[%c0_14, %c0_15], %15 {strides = array<i32>} : memref<128x768xf32, #tpu.memory_space<vmem>>, vector<128x768xf32>,
    } else {
    }
    return
  }
  func.func @transform_0(%arg0: i32, %arg1: i32, %arg2: i32) -> (i32, i32) {
    %c0_i32 = arith.constant 0 : i32
    return %arg0, %arg2 : i32, i32
  }
  func.func @transform_1(%arg0: i32, %arg1: i32, %arg2: i32) -> (i32, i32) {
    %c0_i32 = arith.constant 0 : i32
    return %arg2, %arg1 : i32, i32
  }
  func.func @transform_2(%arg0: i32, %arg1: i32, %arg2: i32) -> (i32, i32) {
    %c0_i32 = arith.constant 0 : i32
    %c0_i32_0 = arith.constant 0 : i32
    return %c0_i32, %arg1 : i32, i32
  }
  func.func @transform_3(%arg0: i32, %arg1: i32, %arg2: i32) -> (i32, i32) {
    %c0_i32 = arith.constant 0 : i32
    return %arg0, %arg1 : i32, i32
  }
}

</mosaic_0001>

<bundles_post_ra>
// kernel: tpu_custom_call.1
= control target key start
LH: loop header
LB: loop body
LE: loop exit
PB: predicated region body
PF: predicated region fallthrough
CT: control target
= control target key end

     0   :  { %8 = vsyncpa [#allocation4], 0  ;;  %s2118_s0 = inlined_call_operand.hbm [shape: f32[128,256], index: 0, kind: input, shape index: {}]   ;;  %s2119_s1 = inlined_call_operand.hbm [shape: f32[256,768], index: 1, kind: input, shape index: {}]   ;;  %s2120_s2 = inlined_call_operand.vmem [shape: f32[1,768], index: 2, kind: input, shape index: {}]   ;;  %s2121_s3 = inlined_call_operand.hbm [shape: f32[128,768], index: 3, kind: output, shape index: {}]  }
   0x1   :  { %9 = vsyncpa [#allocation7], 0 }
   0x2   :  { %10 = vsyncpa [#allocation5], 0  ;;  %s1782_s12 = smov [#allocation3]   ;;  %s1710_s16 = scalar_lea.hbm %s2118_s0, 4096 }
   0x3   :  { %s16_s13 = sshll.u32 %s1782_s12, 4  ;;  %p1711_p0 = scmp.ne.s32.totalorder %s2118_s0, %s1710_s16  ;;  %s17_s13 = int_to_ptr.vmem [resolvable:$true] %s16_s13 }
   0x4   :  { %p1714_p1 = scmp.lt.u32.totalorder %s1710_s16, %s2118_s0 }
   0x6   :  { %p1716_p2 = pnand %p1714_p1, %p1711_p0 }
   0x8   :  { %1719 = shalt.err (!%p1716_p2)
}
   0x9   :  { %s1720_s21 = scalar_lea.vmem %s17_s13, 4096  ;;  %p1725_p4 = scmp.lt.s32.totalorder %s17_s13, %s17_s13 }
   0xa   :  { %p1721_p3 = scmp.ne.s32.totalorder %s17_s13, %s1720_s21  ;;  %p1726_p5 = scmp.lt.s32.totalorder %s1720_s21, %s1720_s21 }
   0xc   :  { %p1727_p6 = por %p1726_p5, %p1725_p4 }
   0xe   :  { %p1728_p7 = pnand %p1727_p6, %p1721_p3 }
  0x10   :  { %1731 = shalt.err (!%p1728_p7)
}
  0x11   :  { %s1783_s22 = smov 256   ;;  %s1784_s23 = smov 16  }
  0x12   :  { %22 = dma.hbm_to_vmem [thread:$0]  %s2118_s0, 4096, %s17_s13, [#allocation4], %s1783_s22, %s1783_s22, %s1784_s23  }
  0x13   :  { %s1785_s26 = smov [#allocation6]   ;;  %s1732_s30 = scalar_lea.hbm %s2119_s1, 24576 }
  0x14   :  { %s28_s27 = sshll.u32 %s1785_s26, 4  ;;  %p1733_p8 = scmp.ne.s32.totalorder %s2119_s1, %s1732_s30  ;;  %s29_s27 = int_to_ptr.vmem [resolvable:$true] %s28_s27 }
  0x15   :  { %p1736_p9 = scmp.lt.u32.totalorder %s1732_s30, %s2119_s1 }
  0x17   :  { %p1738_p10 = pnand %p1736_p9, %p1733_p8 }
  0x19   :  { %1741 = shalt.err (!%p1738_p10)
}
  0x1a   :  { %s1742_s8 = scalar_lea.vmem %s29_s27, 24576  ;;  %p1747_p12 = scmp.lt.s32.totalorder %s29_s27, %s29_s27 }
  0x1b   :  { %p1743_p11 = scmp.ne.s32.totalorder %s29_s27, %s1742_s8  ;;  %p1748_p13 = scmp.lt.s32.totalorder %s1742_s8, %s1742_s8 }
  0x1d   :  { %p1749_p0 = por %p1748_p13, %p1747_p12 }
  0x1f   :  { %p1750_p1 = pnand %p1749_p0, %p1743_p11 }
  0x21   :  { %1753 = shalt.err (!%p1750_p1)
}
  0x22   :  { %s1786_s0 = smov 768   ;;  %s1787_s9 = smov 48  }
  0x23   :  { %34 = dma.hbm_to_vmem [thread:$0]  %s2119_s1, 24576, %s29_s27, [#allocation7], %s1786_s0, %s1786_s0, %s1787_s9  }
  0x24   :  { %1776 = dma.done.wait [#allocation4], 4096  }
  0x25   :  { %1777 = vsyncadd [#allocation4], 4294963200 }
  0x26   :  { %1778 = dma.done.wait [#allocation7], 24576  }
  0x27   :  { %1779 = vsyncadd [#allocation7], 4294942720  ;;  %v272_v0 = vld [vmem:[#allocation6 + $0x8] sm:$0xff]  ;;  %v278_v1 = vld [vmem:[#allocation6 + $0x38] sm:$0xff] }
  0x28   :  { %v274_v2 = vld [vmem:[#allocation6 + $0x18] sm:$0xff]  ;;  %v1479_v3 = vpack.c.bf16 %v278_v1, %v272_v0  ;;  %v280_v4 = vld [vmem:[#allocation6 + $0x48] sm:$0xff]  ;;  %v271_v5 = vld [vmem:[#allocation6] sm:$0xff] }
  0x29   :  { %v277_v6 = vld [vmem:[#allocation6 + $0x30] sm:$0xff]  ;;  %v1543_v7 = vpack.c.bf16 %v280_v4, %v274_v2  ;;  %v279_v10 = vld [vmem:[#allocation6 + $0x40] sm:$0xff]  ;;  %v284_v11 = vld [vmem:[#allocation6 + $0x68] sm:$0xff] }
  0x2a   :  { %v1481_v8 = vpack.c.bf16 %v277_v6, %v271_v5  ;;  %v273_v9 = vld [vmem:[#allocation6 + $0x10] sm:$0xff]  ;;  %1480 = vmatprep.subr.bf16.mxu0 %v1479_v3  ;;  %v290_v13 = vld [vmem:[#allocation6 + $0x98] sm:$0xff]  ;;  %v292_v15 = vld [vmem:[#allocation6 + $0xa8] sm:$0xff] }
  0x2b   :  { %v1545_v12 = vpack.c.bf16 %v279_v10, %v273_v9  ;;  %v286_v14 = vld [vmem:[#allocation6 + $0x78] sm:$0xff]  ;;  %1544 = vmatprep.subr.bf16.mxu1 %v1543_v7  ;;  %v1483_v16 = vpack.c.bf16 %v290_v13, %v284_v11  ;;  %v283_v18 = vld [vmem:[#allocation6 + $0x60] sm:$0xff]  ;;  %v289_v19 = vld [vmem:[#allocation6 + $0x90] sm:$0xff] }
  0x2c   :  { %1482 = vmatpush1.bf16.msra.mxu0 %v1481_v8  ;;  %v1547_v17 = vpack.c.bf16 %v292_v15, %v286_v14  ;;  %v285_v20 = vld [vmem:[#allocation6 + $0x70] sm:$0xff]  ;;  %v1485_v21 = vpack.c.bf16 %v289_v19, %v283_v18  ;;  %v291_v22 = vld [vmem:[#allocation6 + $0xa0] sm:$0xff]  ;;  %v296_v23 = vld [vmem:[#allocation6 + $0xc8] sm:$0xff] }
  0x2d   :  { %1546 = vmatpush1.bf16.msra.mxu1 %v1545_v12  ;;  %v302_v24 = vld [vmem:[#allocation6 + $0xf8] sm:$0xff]  ;;  %1484 = vmatprep.subr.bf16.mxu0 %v1483_v16  ;;  %v1549_v25 = vpack.c.bf16 %v291_v22, %v285_v20  ;;  %v304_v28 = vld [vmem:[#allocation6 + $0x108] sm:$0xff]  ;;  %v295_v29 = vld [vmem:[#allocation6 + $0xc0] sm:$0xff] }
  0x2e   :  { %1548 = vmatprep.subr.bf16.mxu1 %v1547_v17  ;;  %v1487_v26 = vpack.c.bf16 %v302_v24, %v296_v23  ;;  %v298_v27 = vld [vmem:[#allocation6 + $0xd8] sm:$0xff]  ;;  %v301_v31 = vld [vmem:[#allocation6 + $0xf0] sm:$0xff]  ;;  %v303_v33 = vld [vmem:[#allocation6 + $0x100] sm:$0xff] }
  0x2f   :  { %v1551_v30 = vpack.c.bf16 %v304_v28, %v298_v27  ;;  %v297_v32 = vld [vmem:[#allocation6 + $0xd0] sm:$0xff]  ;;  %v1489_v34 = vpack.c.bf16 %v301_v31, %v295_v29  ;;  %v308_v35 = vld [vmem:[#allocation6 + $0x128] sm:$0xff]  ;;  %v314_v36 = vld [vmem:[#allocation6 + $0x158] sm:$0xff] }
  0x30   :  { %1486 = vmatpush1.bf16.msra.mxu0 %v1485_v21  ;;  %v310_v37 = vld [vmem:[#allocation6 + $0x138] sm:$0xff]  ;;  %v1553_v38 = vpack.c.bf16 %v303_v33, %v297_v32  ;;  %v1491_v39 = vpack.c.bf16 %v314_v36, %v308_v35  ;;  %v316_v40 = vld [vmem:[#allocation6 + $0x168] sm:$0xff]  ;;  %v307_v41 = vld [vmem:[#allocation6 + $0x120] sm:$0xff] }
  0x31   :  { %1550 = vmatpush1.bf16.msra.mxu1 %v1549_v25  ;;  %1488 = vmatprep.subr.bf16.mxu0 %v1487_v26  ;;  %v313_v42 = vld [vmem:[#allocation6 + $0x150] sm:$0xff]  ;;  %v1555_v43 = vpack.c.bf16 %v316_v40, %v310_v37  ;;  %v315_v45 = vld [vmem:[#allocation6 + $0x160] sm:$0xff]  ;;  %v320_v46 = vld [vmem:[#allocation6 + $0x188] sm:$0xff] }
  0x32   :  { %1552 = vmatprep.subr.bf16.mxu1 %v1551_v30  ;;  %v309_v44 = vld [vmem:[#allocation6 + $0x130] sm:$0xff]  ;;  %v326_v47 = vld [vmem:[#allocation6 + $0x1b8] sm:$0xff]  ;;  %v328_v49 = vld [vmem:[#allocation6 + $0x1c8] sm:$0xff]  ;;  %v1493_v50 = vpack.c.bf16 %v313_v42, %v307_v41 }
  0x33   :  { %v322_v48 = vld [vmem:[#allocation6 + $0x198] sm:$0xff]  ;;  %v1557_v51 = vpack.c.bf16 %v315_v45, %v309_v44  ;;  %v1495_v52 = vpack.c.bf16 %v326_v47, %v320_v46  ;;  %v319_v53 = vld [vmem:[#allocation6 + $0x180] sm:$0xff]  ;;  %v325_v54 = vld [vmem:[#allocation6 + $0x1b0] sm:$0xff] }
  0x34   :  { %1490 = vmatpush1.bf16.msra.mxu0 %v1489_v34  ;;  %v321_v55 = vld [vmem:[#allocation6 + $0x190] sm:$0xff]  ;;  %v1559_v56 = vpack.c.bf16 %v328_v49, %v322_v48  ;;  %v327_v57 = vld [vmem:[#allocation6 + $0x1c0] sm:$0xff]  ;;  %v332_v58 = vld [vmem:[#allocation6 + $0x1e8] sm:$0xff]  ;;  %v1497_v62 = vpack.c.bf16 %v325_v54, %v319_v53 }
  0x35   :  { %1554 = vmatpush1.bf16.msra.mxu1 %v1553_v38  ;;  %1492 = vmatprep.subr.bf16.mxu0 %v1491_v39  ;;  %v338_v59 = vld [vmem:[#allocation6 + $0x218] sm:$0xff]  ;;  %v340_v61 = vld [vmem:[#allocation6 + $0x228] sm:$0xff]  ;;  %v1561_v63 = vpack.c.bf16 %v327_v57, %v321_v55  ;;  %v331_v1 = vld [vmem:[#allocation6 + $0x1e0] sm:$0xff] }
  0x36   :  { %1556 = vmatprep.subr.bf16.mxu1 %v1555_v43  ;;  %v334_v60 = vld [vmem:[#allocation6 + $0x1f8] sm:$0xff]  ;;  %v1499_v0 = vpack.c.bf16 %v338_v59, %v332_v58  ;;  %v337_v2 = vld [vmem:[#allocation6 + $0x210] sm:$0xff]  ;;  %v339_v5 = vld [vmem:[#allocation6 + $0x220] sm:$0xff] }
  0x37   :  { %v333_v3 = vld [vmem:[#allocation6 + $0x1f0] sm:$0xff]  ;;  %v1563_v4 = vpack.c.bf16 %v340_v61, %v334_v60  ;;  %v344_v6 = vld [vmem:[#allocation6 + $0x248] sm:$0xff]  ;;  %v350_v7 = vld [vmem:[#allocation6 + $0x278] sm:$0xff]  ;;  %v1501_v10 = vpack.c.bf16 %v337_v2, %v331_v1 }
  0x38   :  { %1494 = vmatpush1.bf16.msra.mxu0 %v1493_v50  ;;  %v346_v8 = vld [vmem:[#allocation6 + $0x258] sm:$0xff]  ;;  %v352_v9 = vld [vmem:[#allocation6 + $0x288] sm:$0xff]  ;;  %v1565_v11 = vpack.c.bf16 %v339_v5, %v333_v3  ;;  %v1503_v12 = vpack.c.bf16 %v350_v7, %v344_v6  ;;  %v343_v13 = vld [vmem:[#allocation6 + $0x240] sm:$0xff] }
  0x39   :  { %1558 = vmatpush1.bf16.msra.mxu1 %v1557_v51  ;;  %1496 = vmatprep.subr.bf16.mxu0 %v1495_v52  ;;  %v349_v14 = vld [vmem:[#allocation6 + $0x270] sm:$0xff]  ;;  %v1567_v16 = vpack.c.bf16 %v352_v9, %v346_v8  ;;  %v351_v17 = vld [vmem:[#allocation6 + $0x280] sm:$0xff]  ;;  %v356_v18 = vld [vmem:[#allocation6 + $0x2a8] sm:$0xff] }
  0x3a   :  { %1560 = vmatprep.subr.bf16.mxu1 %v1559_v56  ;;  %v345_v15 = vld [vmem:[#allocation6 + $0x250] sm:$0xff]  ;;  %v362_v19 = vld [vmem:[#allocation6 + $0x2d8] sm:$0xff]  ;;  %v364_v21 = vld [vmem:[#allocation6 + $0x2e8] sm:$0xff]  ;;  %v1505_v22 = vpack.c.bf16 %v349_v14, %v343_v13 }
  0x3b   :  { %v358_v20 = vld [vmem:[#allocation6 + $0x2b8] sm:$0xff]  ;;  %v1569_v23 = vpack.c.bf16 %v351_v17, %v345_v15  ;;  %v1507_v24 = vpack.c.bf16 %v362_v19, %v356_v18  ;;  %v355_v25 = vld [vmem:[#allocation6 + $0x2a0] sm:$0xff]  ;;  %v361_v26 = vld [vmem:[#allocation6 + $0x2d0] sm:$0xff] }
  0x3c   :  { %1498 = vmatpush1.bf16.msra.mxu0 %v1497_v62  ;;  %v357_v27 = vld [vmem:[#allocation6 + $0x2b0] sm:$0xff]  ;;  %v1571_v28 = vpack.c.bf16 %v364_v21, %v358_v20  ;;  %v363_v29 = vld [vmem:[#allocation6 + $0x2e0] sm:$0xff]  ;;  %v368_v30 = vld [vmem:[#allocation6 + $0x308] sm:$0xff]  ;;  %v1509_v34 = vpack.c.bf16 %v361_v26, %v355_v25 }
  0x3d   :  { %1562 = vmatpush1.bf16.msra.mxu1 %v1561_v63  ;;  %1500 = vmatprep.subr.bf16.mxu0 %v1499_v0  ;;  %v374_v31 = vld [vmem:[#allocation6 + $0x338] sm:$0xff]  ;;  %v376_v33 = vld [vmem:[#allocation6 + $0x348] sm:$0xff]  ;;  %v1573_v35 = vpack.c.bf16 %v363_v29, %v357_v27  ;;  %v367_v37 = vld [vmem:[#allocation6 + $0x300] sm:$0xff] }
  0x3e   :  { %1564 = vmatprep.subr.bf16.mxu1 %v1563_v4  ;;  %v370_v32 = vld [vmem:[#allocation6 + $0x318] sm:$0xff]  ;;  %v1511_v36 = vpack.c.bf16 %v374_v31, %v368_v30  ;;  %v373_v38 = vld [vmem:[#allocation6 + $0x330] sm:$0xff]  ;;  %v375_v41 = vld [vmem:[#allocation6 + $0x340] sm:$0xff] }
  0x3f   :  { %v369_v39 = vld [vmem:[#allocation6 + $0x310] sm:$0xff]  ;;  %v1575_v40 = vpack.c.bf16 %v376_v33, %v370_v32  ;;  %v380_v42 = vld [vmem:[#allocation6 + $0x368] sm:$0xff]  ;;  %v386_v43 = vld [vmem:[#allocation6 + $0x398] sm:$0xff]  ;;  %v1513_v46 = vpack.c.bf16 %v373_v38, %v367_v37 }
  0x40   :  { %1502 = vmatpush1.bf16.msra.mxu0 %v1501_v10  ;;  %v382_v44 = vld [vmem:[#allocation6 + $0x378] sm:$0xff]  ;;  %v388_v45 = vld [vmem:[#allocation6 + $0x3a8] sm:$0xff]  ;;  %v1577_v47 = vpack.c.bf16 %v375_v41, %v369_v39  ;;  %v1515_v48 = vpack.c.bf16 %v386_v43, %v380_v42  ;;  %v379_v49 = vld [vmem:[#allocation6 + $0x360] sm:$0xff] }
  0x41   :  { %1566 = vmatpush1.bf16.msra.mxu1 %v1565_v11  ;;  %1504 = vmatprep.subr.bf16.mxu0 %v1503_v12  ;;  %v385_v50 = vld [vmem:[#allocation6 + $0x390] sm:$0xff]  ;;  %v1579_v52 = vpack.c.bf16 %v388_v45, %v382_v44  ;;  %v387_v53 = vld [vmem:[#allocation6 + $0x3a0] sm:$0xff]  ;;  %v392_v54 = vld [vmem:[#allocation6 + $0x3c8] sm:$0xff] }
  0x42   :  { %1568 = vmatprep.subr.bf16.mxu1 %v1567_v16  ;;  %v381_v51 = vld [vmem:[#allocation6 + $0x370] sm:$0xff]  ;;  %v398_v55 = vld [vmem:[#allocation6 + $0x3f8] sm:$0xff]  ;;  %v400_v57 = vld [vmem:[#allocation6 + $0x408] sm:$0xff]  ;;  %v1517_v58 = vpack.c.bf16 %v385_v50, %v379_v49 }
  0x43   :  { %v394_v56 = vld [vmem:[#allocation6 + $0x3d8] sm:$0xff]  ;;  %v1581_v59 = vpack.c.bf16 %v387_v53, %v381_v51  ;;  %v1519_v60 = vpack.c.bf16 %v398_v55, %v392_v54  ;;  %v391_v61 = vld [vmem:[#allocation6 + $0x3c0] sm:$0xff]  ;;  %v397_v62 = vld [vmem:[#allocation6 + $0x3f0] sm:$0xff] }
  0x44   :  { %1506 = vmatpush1.bf16.msra.mxu0 %v1505_v22  ;;  %v393_v63 = vld [vmem:[#allocation6 + $0x3d0] sm:$0xff]  ;;  %v1583_v0 = vpack.c.bf16 %v400_v57, %v394_v56  ;;  %v399_v1 = vld [vmem:[#allocation6 + $0x400] sm:$0xff]  ;;  %v404_v2 = vld [vmem:[#allocation6 + $0x428] sm:$0xff]  ;;  %v1521_v6 = vpack.c.bf16 %v397_v62, %v391_v61 }
  0x45   :  { %1570 = vmatpush1.bf16.msra.mxu1 %v1569_v23  ;;  %1508 = vmatprep.subr.bf16.mxu0 %v1507_v24  ;;  %v410_v3 = vld [vmem:[#allocation6 + $0x458] sm:$0xff]  ;;  %v412_v5 = vld [vmem:[#allocation6 + $0x468] sm:$0xff]  ;;  %v403_v7 = vld [vmem:[#allocation6 + $0x420] sm:$0xff]  ;;  %v1585_v8 = vpack.c.bf16 %v399_v1, %v393_v63 }
  0x46   :  { %1572 = vmatprep.subr.bf16.mxu1 %v1571_v28  ;;  %v406_v4 = vld [vmem:[#allocation6 + $0x438] sm:$0xff]  ;;  %v1523_v9 = vpack.c.bf16 %v410_v3, %v404_v2  ;;  %v409_v10 = vld [vmem:[#allocation6 + $0x450] sm:$0xff]  ;;  %v411_v12 = vld [vmem:[#allocation6 + $0x460] sm:$0xff] }
  0x47   :  { %v405_v11 = vld [vmem:[#allocation6 + $0x430] sm:$0xff]  ;;  %v1587_v13 = vpack.c.bf16 %v412_v5, %v406_v4  ;;  %v416_v14 = vld [vmem:[#allocation6 + $0x488] sm:$0xff]  ;;  %v422_v15 = vld [vmem:[#allocation6 + $0x4b8] sm:$0xff]  ;;  %v1525_v19 = vpack.c.bf16 %v409_v10, %v403_v7 }
  0x48   :  { %1510 = vmatpush1.bf16.msra.mxu0 %v1509_v34  ;;  %v1836_v16 = vld [vmem:[#allocation3 + $0x8] sm:$0xff]  ;;  %v418_v17 = vld [vmem:[#allocation6 + $0x498] sm:$0xff]  ;;  %v1589_v20 = vpack.c.bf16 %v411_v12, %v405_v11  ;;  %v1527_v21 = vpack.c.bf16 %v422_v15, %v416_v14  ;;  %v415_v22 = vld [vmem:[#allocation6 + $0x480] sm:$0xff] }
  0x49   :  { %1574 = vmatpush1.bf16.msra.mxu1 %v1573_v35  ;;  %1512 = vmatprep.subr.bf16.mxu0 %v1511_v36  ;;  %v424_v18 = vld [vmem:[#allocation6 + $0x4c8] sm:$0xff]  ;;  %v421_v23 = vld [vmem:[#allocation6 + $0x4b0] sm:$0xff]  ;;  %v423_v26 = vld [vmem:[#allocation6 + $0x4c0] sm:$0xff] }
  0x4a   :  { %1576 = vmatprep.subr.bf16.mxu1 %v1575_v40  ;;  %527 = vmatprep.mubr.f32.mxu0 %v1836_v16  ;;  %v417_v24 = vld [vmem:[#allocation6 + $0x490] sm:$0xff]  ;;  %v1591_v25 = vpack.c.bf16 %v424_v18, %v418_v17  ;;  %v428_v27 = vld [vmem:[#allocation6 + $0x4e8] sm:$0xff]  ;;  %v434_v28 = vld [vmem:[#allocation6 + $0x518] sm:$0xff]  ;;  %v1529_v31 = vpack.c.bf16 %v421_v23, %v415_v22 }
  0x4b   :  { %688 = vmatprep.mubr.f32.mxu1 %v1836_v16  ;;  %v430_v29 = vld [vmem:[#allocation6 + $0x4f8] sm:$0xff]  ;;  %v436_v30 = vld [vmem:[#allocation6 + $0x528] sm:$0xff]  ;;  %v1593_v32 = vpack.c.bf16 %v423_v26, %v417_v24  ;;  %v1531_v33 = vpack.c.bf16 %v434_v28, %v428_v27  ;;  %v427_v34 = vld [vmem:[#allocation6 + $0x4e0] sm:$0xff] }
  0x4c   :  { %1514 = vmatpush1.bf16.msra.mxu0 %v1513_v46  ;;  %v433_v35 = vld [vmem:[#allocation6 + $0x510] sm:$0xff]  ;;  %v1595_v37 = vpack.c.bf16 %v436_v30, %v430_v29  ;;  %v435_v38 = vld [vmem:[#allocation6 + $0x520] sm:$0xff]  ;;  %v440_v39 = vld [vmem:[#allocation6 + $0x548] sm:$0xff] }
  0x4d   :  { %1578 = vmatpush1.bf16.msra.mxu1 %v1577_v47  ;;  %1516 = vmatprep.subr.bf16.mxu0 %v1515_v48  ;;  %v429_v36 = vld [vmem:[#allocation6 + $0x4f0] sm:$0xff]  ;;  %v446_v40 = vld [vmem:[#allocation6 + $0x578] sm:$0xff]  ;;  %v448_v42 = vld [vmem:[#allocation6 + $0x588] sm:$0xff]  ;;  %v1533_v43 = vpack.c.bf16 %v433_v35, %v427_v34 }
  0x4e   :  { %1580 = vmatprep.subr.bf16.mxu1 %v1579_v52  ;;  %v442_v41 = vld [vmem:[#allocation6 + $0x558] sm:$0xff]  ;;  %v1597_v44 = vpack.c.bf16 %v435_v38, %v429_v36  ;;  %v1535_v45 = vpack.c.bf16 %v446_v40, %v440_v39  ;;  %v439_v46 = vld [vmem:[#allocation6 + $0x540] sm:$0xff]  ;;  %v445_v47 = vld [vmem:[#allocation6 + $0x570] sm:$0xff] }
  0x4f   :  { %v441_v48 = vld [vmem:[#allocation6 + $0x550] sm:$0xff]  ;;  %v1599_v49 = vpack.c.bf16 %v448_v42, %v442_v41  ;;  %v447_v50 = vld [vmem:[#allocation6 + $0x580] sm:$0xff]  ;;  %v452_v51 = vld [vmem:[#allocation6 + $0x5a8] sm:$0xff]  ;;  %v1537_v55 = vpack.c.bf16 %v445_v47, %v439_v46 }
  0x50   :  { %1518 = vmatpush1.bf16.msra.mxu0 %v1517_v58  ;;  %v458_v52 = vld [vmem:[#allocation6 + $0x5d8] sm:$0xff]  ;;  %v460_v54 = vld [vmem:[#allocation6 + $0x5e8] sm:$0xff]  ;;  %v1601_v56 = vpack.c.bf16 %v447_v50, %v441_v48  ;;  %v451_v58 = vld [vmem:[#allocation6 + $0x5a0] sm:$0xff] }
  0x51   :  { %1582 = vmatpush1.bf16.msra.mxu1 %v1581_v59  ;;  %1520 = vmatprep.subr.bf16.mxu0 %v1519_v60  ;;  %v454_v53 = vld [vmem:[#allocation6 + $0x5b8] sm:$0xff]  ;;  %v1539_v57 = vpack.c.bf16 %v458_v52, %v452_v51  ;;  %v457_v59 = vld [vmem:[#allocation6 + $0x5d0] sm:$0xff]  ;;  %v459_v62 = vld [vmem:[#allocation6 + $0x5e0] sm:$0xff] }
  0x52   :  { %1584 = vmatprep.subr.bf16.mxu1 %v1583_v0  ;;  %v453_v60 = vld [vmem:[#allocation6 + $0x5b0] sm:$0xff]  ;;  %v1603_v61 = vpack.c.bf16 %v460_v54, %v454_v53  ;;  %v276_v63 = vld [vmem:[#allocation6 + $0x28] sm:$0xff]  ;;  %v282_v0 = vld [vmem:[#allocation6 + $0x58] sm:$0xff]  ;;  %v1541_v1 = vpack.c.bf16 %v457_v59, %v451_v58 }
  0x53   :  { %v1605_v2 = vpack.c.bf16 %v459_v62, %v453_v60  ;;  %v1607_v3 = vpack.c.bf16 %v282_v0, %v276_v63  ;;  %v275_v4 = vld [vmem:[#allocation6 + $0x20] sm:$0xff]  ;;  %v281_v5 = vld [vmem:[#allocation6 + $0x50] sm:$0xff]  ;;  %v294_v7 = vld [vmem:[#allocation6 + $0xb8] sm:$0xff] }
  0x54   :  { %1522 = vmatpush1.bf16.msra.mxu0 %v1521_v6  ;;  %v288_v6 = vld [vmem:[#allocation6 + $0x88] sm:$0xff]  ;;  %v287_v10 = vld [vmem:[#allocation6 + $0x80] sm:$0xff]  ;;  %v293_v11 = vld [vmem:[#allocation6 + $0xb0] sm:$0xff] }
  0x55   :  { %1586 = vmatpush1.bf16.msra.mxu1 %v1585_v8  ;;  %1524 = vmatprep.subr.bf16.mxu0 %v1523_v9  ;;  %v1840_v8 = vld [vmem:[#allocation3] sm:$0xff]  ;;  %v1609_v9 = vpack.c.bf16 %v281_v5, %v275_v4  ;;  %v1842_v12 = vld [vmem:[#allocation3 + $0x18] sm:$0xff]  ;;  %v300_v14 = vld [vmem:[#allocation6 + $0xe8] sm:$0xff]  ;;  %v1613_v18 = vpack.c.bf16 %v293_v11, %v287_v10 }
  0x56   :  { %1588 = vmatprep.subr.bf16.mxu1 %v1587_v13  ;;  %v1611_v13 = vpack.c.bf16 %v294_v7, %v288_v6  ;;  %v306_v15 = vld [vmem:[#allocation6 + $0x118] sm:$0xff]  ;;  %v1846_v17 = vld [vmem:[#allocation3 + $0x10] sm:$0xff]  ;;  %v312_v23 = vld [vmem:[#allocation6 + $0x148] sm:$0xff] }
  0x57   :  { %v1615_v22 = vpack.c.bf16 %v306_v15, %v300_v14  ;;  %v318_v24 = vld [vmem:[#allocation6 + $0x178] sm:$0xff]  ;;  %v311_v27 = vld [vmem:[#allocation6 + $0x140] sm:$0xff]  ;;  %v317_v28 = vld [vmem:[#allocation6 + $0x170] sm:$0xff] }
  0x58   :  { %1526 = vmatpush1.bf16.msra.mxu0 %v1525_v19  ;;  %v299_v19 = vld [vmem:[#allocation6 + $0xe0] sm:$0xff]  ;;  %v1858_v29 = vld [vmem:[#allocation3 + $0x38] sm:$0xff]  ;;  %v1619_v30 = vpack.c.bf16 %v318_v24, %v312_v23  ;;  %v1621_v34 = vpack.c.bf16 %v317_v28, %v311_v27  ;;  %v329_v36 = vld [vmem:[#allocation6 + $0x1d0] sm:$0xff] }
  0x59   :  { %1590 = vmatpush1.bf16.msra.mxu1 %v1589_v20  ;;  %1528 = vmatprep.subr.bf16.mxu0 %v1527_v21  ;;  %v305_v20 = vld [vmem:[#allocation6 + $0x110] sm:$0xff]  ;;  %v1850_v21 = vld [vmem:[#allocation3 + $0x28] sm:$0xff]  ;;  %v323_v35 = vld [vmem:[#allocation6 + $0x1a0] sm:$0xff] }
  0x5a   :  { %1592 = vmatprep.subr.bf16.mxu1 %v1591_v25  ;;  %v1854_v25 = vld [vmem:[#allocation3 + $0x20] sm:$0xff]  ;;  %v1617_v26 = vpack.c.bf16 %v305_v20, %v299_v19  ;;  %v336_v39 = vld [vmem:[#allocation6 + $0x208] sm:$0xff]  ;;  %v342_v40 = vld [vmem:[#allocation6 + $0x238] sm:$0xff]  ;;  %v1625_v42 = vpack.c.bf16 %v329_v36, %v323_v35 }
  0x5b   :  { %v1870_v41 = vld [vmem:[#allocation3 + $0x40] sm:$0xff]  ;;  %v1627_v46 = vpack.c.bf16 %v342_v40, %v336_v39  ;;  %v348_v47 = vld [vmem:[#allocation6 + $0x268] sm:$0xff]  ;;  %v354_v48 = vld [vmem:[#allocation6 + $0x298] sm:$0xff] }
  0x5c   :  { %1530 = vmatpush1.bf16.msra.mxu0 %v1529_v31  ;;  %v324_v31 = vld [vmem:[#allocation6 + $0x1a8] sm:$0xff]  ;;  %v347_v51 = vld [vmem:[#allocation6 + $0x260] sm:$0xff]  ;;  %v353_v52 = vld [vmem:[#allocation6 + $0x290] sm:$0xff]  ;;  %v1631_v54 = vpack.c.bf16 %v354_v48, %v348_v47 }
  0x5d   :  { %1594 = vmatpush1.bf16.msra.mxu1 %v1593_v32  ;;  %1532 = vmatprep.subr.bf16.mxu0 %v1531_v33  ;;  %v330_v32 = vld [vmem:[#allocation6 + $0x1d8] sm:$0xff]  ;;  %v1862_v33 = vld [vmem:[#allocation3 + $0x30] sm:$0xff]  ;;  %v1882_v53 = vld [vmem:[#allocation3 + $0x68] sm:$0xff]  ;;  %v1633_v58 = vpack.c.bf16 %v353_v52, %v347_v51 }
  0x5e   :  { %1596 = vmatprep.subr.bf16.mxu1 %v1595_v37  ;;  %v1866_v37 = vld [vmem:[#allocation3 + $0x48] sm:$0xff]  ;;  %v1623_v38 = vpack.c.bf16 %v330_v32, %v324_v31  ;;  %v359_v59 = vld [vmem:[#allocation6 + $0x2c0] sm:$0xff]  ;;  %v365_v60 = vld [vmem:[#allocation6 + $0x2f0] sm:$0xff] }
  0x5f   :  { %v372_v63 = vld [vmem:[#allocation6 + $0x328] sm:$0xff]  ;;  %v378_v0 = vld [vmem:[#allocation6 + $0x358] sm:$0xff]  ;;  %v377_v4 = vld [vmem:[#allocation6 + $0x350] sm:$0xff] }
  0x60   :  { %1534 = vmatpush1.bf16.msra.mxu0 %v1533_v43  ;;  %v335_v43 = vld [vmem:[#allocation6 + $0x200] sm:$0xff]  ;;  %v1898_v5 = vld [vmem:[#allocation3 + $0x88] sm:$0xff]  ;;  %v1639_v6 = vpack.c.bf16 %v378_v0, %v372_v63  ;;  %v389_v14 = vld [vmem:[#allocation6 + $0x3b0] sm:$0xff] }
  0x61   :  { %1598 = vmatpush1.bf16.msra.mxu1 %v1597_v44  ;;  %1536 = vmatprep.subr.bf16.mxu0 %v1535_v45  ;;  %v341_v44 = vld [vmem:[#allocation6 + $0x230] sm:$0xff]  ;;  %v1874_v45 = vld [vmem:[#allocation3 + $0x58] sm:$0xff]  ;;  %v384_v7 = vld [vmem:[#allocation6 + $0x388] sm:$0xff] }
  0x62   :  { %1600 = vmatprep.subr.bf16.mxu1 %v1599_v49  ;;  %v1878_v49 = vld [vmem:[#allocation3 + $0x50] sm:$0xff]  ;;  %v1629_v50 = vpack.c.bf16 %v341_v44, %v335_v43  ;;  %v1902_v10 = vld [vmem:[#allocation3 + $0x80] sm:$0xff]  ;;  %v1906_v15 = vld [vmem:[#allocation3 + $0x98] sm:$0xff] }
  0x63   :  { %v396_v19 = vld [vmem:[#allocation6 + $0x3e8] sm:$0xff]  ;;  %v402_v20 = vld [vmem:[#allocation6 + $0x418] sm:$0xff]  ;;  %v395_v24 = vld [vmem:[#allocation6 + $0x3e0] sm:$0xff] }
  0x64   :  { %1538 = vmatpush1.bf16.msra.mxu0 %v1537_v55  ;;  %v360_v55 = vld [vmem:[#allocation6 + $0x2c8] sm:$0xff]  ;;  %v1647_v28 = vpack.c.bf16 %v402_v20, %v396_v19  ;;  %v414_v31 = vld [vmem:[#allocation6 + $0x478] sm:$0xff]  ;;  %v1918_v32 = vld [vmem:[#allocation3 + $0xa0] sm:$0xff] }
  0x65   :  { %1602 = vmatpush1.bf16.msra.mxu1 %v1601_v56  ;;  %1540 = vmatprep.subr.bf16.mxu0 %v1539_v57  ;;  %v366_v56 = vld [vmem:[#allocation6 + $0x2f8] sm:$0xff]  ;;  %v1886_v57 = vld [vmem:[#allocation3 + $0x60] sm:$0xff]  ;;  %v1914_v27 = vld [vmem:[#allocation3 + $0xa8] sm:$0xff] }
  0x66   :  { %1604 = vmatprep.subr.bf16.mxu1 %v1603_v61  ;;  %v1890_v61 = vld [vmem:[#allocation3 + $0x78] sm:$0xff]  ;;  %v1635_v62 = vpack.c.bf16 %v366_v56, %v360_v55  ;;  %v407_v35 = vld [vmem:[#allocation6 + $0x440] sm:$0xff]  ;;  %v413_v36 = vld [vmem:[#allocation6 + $0x470] sm:$0xff] }
  0x67   :  { %v420_v40 = vld [vmem:[#allocation6 + $0x4a8] sm:$0xff]  ;;  %v1926_v43 = vld [vmem:[#allocation3 + $0xb0] sm:$0xff]  ;;  %v1653_v44 = vpack.c.bf16 %v413_v36, %v407_v35  ;;  %v438_v52 = vld [vmem:[#allocation6 + $0x538] sm:$0xff] }
  0x68   :  { %1542 = vmatpush1.bf16.msra.mxu0 %v1541_v1  ;;  %v1894_v1 = vld [vmem:[#allocation3 + $0x70] sm:$0xff]  ;;  %v1930_v48 = vld [vmem:[#allocation3 + $0xc8] sm:$0xff]  ;;  %v431_v56 = vld [vmem:[#allocation6 + $0x500] sm:$0xff] }
  0x69   :  { %1606 = vmatpush1.bf16.msra.mxu1 %v1605_v2  ;;  %1608 = vmatprep.subr.bf16.mxu0 %v1607_v3  ;;  %v1637_v2 = vpack.c.bf16 %v365_v60, %v359_v59  ;;  %v425_v47 = vld [vmem:[#allocation6 + $0x4d0] sm:$0xff]  ;;  %v432_v51 = vld [vmem:[#allocation6 + $0x508] sm:$0xff]  ;;  %v1938_v59 = vld [vmem:[#allocation3 + $0xd8] sm:$0xff] }
  0x6a   :  { %1671 = vmatprep.subr.bf16.mxu1 %v1607_v3  ;;  %v371_v3 = vld [vmem:[#allocation6 + $0x320] sm:$0xff]  ;;  %v1659_v60 = vpack.c.bf16 %v438_v52, %v432_v51  ;;  %v450_v63 = vld [vmem:[#allocation6 + $0x598] sm:$0xff]  ;;  %v1942_v0 = vld [vmem:[#allocation3 + $0xd0] sm:$0xff] }
  0x6b   :  { %528 = vmatmul.mubr.f32.vlgmr.msra.gmra.mrb[0].mxu0 %v1840_v8  ;;  %v1641_v11 = vpack.c.bf16 %v377_v4, %v371_v3  ;;  %v443_v3 = vld [vmem:[#allocation6 + $0x560] sm:$0xff]  ;;  %v449_v4 = vld [vmem:[#allocation6 + $0x590] sm:$0xff]  ;;  %v270_v20 = vld [vmem:[#allocation3 + $0xf8] sm:$0xff] }
  0x6c   :  { %689 = vmatmul.mubr.f32.vlgmr.msra.gmra.mrb[0].mxu1 %v1840_v8  ;;  %1610 = vmatpush1.bf16.msra.mxu0 %v1609_v9  ;;  %v461_v19 = vld [vmem:[#allocation6 + $0x5f0] sm:$0xff] }
  0x6d   :  { %1687 = vmatpush1.bf16.msra.mxu1 %v1609_v9  ;;  %533 = vmatprep.mubr.f32.mxu0 %v1842_v12  ;;  %v390_v9 = vld [vmem:[#allocation6 + $0x3b8] sm:$0xff] }
  0x6e   :  { %694 = vmatprep.mubr.f32.mxu1 %v1842_v12  ;;  %1612 = vmatprep.subr.bf16.mxu0 %v1611_v13 }
  0x6f   :  { %534 = vmatmul.mubr.f32.gmra.mrb[2].mxu0 %v1846_v17  ;;  %1672 = vmatprep.subr.bf16.mxu1 %v1611_v13  ;;  %v383_v13 = vld [vmem:[#allocation6 + $0x380] sm:$0xff] }
  0x70   :  { %695 = vmatmul.mubr.f32.gmra.mrb[2].mxu1 %v1846_v17  ;;  %1614 = vmatpush1.bf16.msra.mxu0 %v1613_v18  ;;  %v1645_v23 = vpack.c.bf16 %v389_v14, %v383_v13  ;;  %v267_v13 = vld [vmem:[#allocation3 + $0xe0] sm:$0xff]  ;;  %v1665_v14 = vpack.c.bf16 %v449_v4, %v443_v3 }
  0x71   :  { %1688 = vmatpush1.bf16.msra.mxu1 %v1613_v18  ;;  %539 = vmatprep.mubr.f32.mxu0 %v1850_v21  ;;  %v1643_v18 = vpack.c.bf16 %v390_v9, %v384_v7  ;;  %v456_v9 = vld [vmem:[#allocation6 + $0x5c8] sm:$0xff] }
  0x72   :  { %700 = vmatprep.mubr.f32.mxu1 %v1850_v21  ;;  %1616 = vmatprep.subr.bf16.mxu0 %v1615_v22 }
  0x73   :  { %540 = vmatmul.mubr.f32.gmra.mrb[4].mxu0 %v1854_v25  ;;  %1673 = vmatprep.subr.bf16.mxu1 %v1615_v22  ;;  %v1910_v22 = vld [vmem:[#allocation3 + $0x90] sm:$0xff] }
  0x74   :  { %701 = vmatmul.mubr.f32.gmra.mrb[4].mxu1 %v1854_v25  ;;  %1618 = vmatpush1.bf16.msra.mxu0 %v1617_v26 }
  0x75   :  { %1689 = vmatpush1.bf16.msra.mxu1 %v1617_v26  ;;  %545 = vmatprep.mubr.f32.mxu0 %v1858_v29  ;;  %v401_v26 = vld [vmem:[#allocation6 + $0x410] sm:$0xff] }
  0x76   :  { %706 = vmatprep.mubr.f32.mxu1 %v1858_v29  ;;  %1620 = vmatprep.subr.bf16.mxu0 %v1619_v30 }
  0x77   :  { %546 = vmatmul.mubr.f32.gmra.mrb[6].mxu0 %v1862_v33  ;;  %1674 = vmatprep.subr.bf16.mxu1 %v1619_v30  ;;  %v408_v30 = vld [vmem:[#allocation6 + $0x448] sm:$0xff] }
  0x78   :  { %707 = vmatmul.mubr.f32.gmra.mrb[6].mxu1 %v1862_v33  ;;  %1622 = vmatpush1.bf16.msra.mxu0 %v1621_v34  ;;  %v1651_v39 = vpack.c.bf16 %v414_v31, %v408_v30 }
  0x79   :  { %1690 = vmatpush1.bf16.msra.mxu1 %v1621_v34  ;;  %551 = vmatprep.mubr.f32.mxu0 %v1866_v37  ;;  %v1649_v34 = vpack.c.bf16 %v401_v26, %v395_v24  ;;  %v269_v24 = vld [vmem:[#allocation3 + $0xf0] sm:$0xff] }
  0x7a   :  { %712 = vmatprep.mubr.f32.mxu1 %v1866_v37  ;;  %1624 = vmatprep.subr.bf16.mxu0 %v1623_v38 }
  0x7b   :  { %552 = vmatmul.mubr.f32.gmra.mrb[8].mxu0 %v1870_v41  ;;  %1675 = vmatprep.subr.bf16.mxu1 %v1623_v38  ;;  %v1922_v38 = vld [vmem:[#allocation3 + $0xb8] sm:$0xff] }
  0x7c   :  { %713 = vmatmul.mubr.f32.gmra.mrb[8].mxu1 %v1870_v41  ;;  %1626 = vmatpush1.bf16.msra.mxu0 %v1625_v42 }
  0x7d   :  { %1691 = vmatpush1.bf16.msra.mxu1 %v1625_v42  ;;  %557 = vmatprep.mubr.f32.mxu0 %v1874_v45  ;;  %v426_v42 = vld [vmem:[#allocation6 + $0x4d8] sm:$0xff] }
  0x7e   :  { %718 = vmatprep.mubr.f32.mxu1 %v1874_v45  ;;  %1628 = vmatprep.subr.bf16.mxu0 %v1627_v46 }
  0x7f   :  { %558 = vmatmul.mubr.f32.gmra.mrb[10].mxu0 %v1878_v49  ;;  %1676 = vmatprep.subr.bf16.mxu1 %v1627_v46  ;;  %v419_v46 = vld [vmem:[#allocation6 + $0x4a0] sm:$0xff] }
  0x80   :  { %719 = vmatmul.mubr.f32.gmra.mrb[10].mxu1 %v1878_v49  ;;  %1630 = vmatpush1.bf16.msra.mxu0 %v1629_v50  ;;  %v1657_v55 = vpack.c.bf16 %v425_v47, %v419_v46 }
  0x81   :  { %1692 = vmatpush1.bf16.msra.mxu1 %v1629_v50  ;;  %563 = vmatprep.mubr.f32.mxu0 %v1882_v53  ;;  %v1655_v50 = vpack.c.bf16 %v426_v42, %v420_v40 }
  0x82   :  { %724 = vmatprep.mubr.f32.mxu1 %v1882_v53  ;;  %1632 = vmatprep.subr.bf16.mxu0 %v1631_v54 }
  0x83   :  { %564 = vmatmul.mubr.f32.gmra.mrb[12].mxu0 %v1886_v57  ;;  %1677 = vmatprep.subr.bf16.mxu1 %v1631_v54  ;;  %v1934_v54 = vld [vmem:[#allocation3 + $0xc0] sm:$0xff] }
  0x84   :  { %725 = vmatmul.mubr.f32.gmra.mrb[12].mxu1 %v1886_v57  ;;  %1634 = vmatpush1.bf16.msra.mxu0 %v1633_v58 }
  0x85   :  { %1693 = vmatpush1.bf16.msra.mxu1 %v1633_v58  ;;  %569 = vmatprep.mubr.f32.mxu0 %v1890_v61  ;;  %v437_v58 = vld [vmem:[#allocation6 + $0x530] sm:$0xff] }
  0x86   :  { %730 = vmatprep.mubr.f32.mxu1 %v1890_v61  ;;  %1636 = vmatprep.subr.bf16.mxu0 %v1635_v62 }
  0x87   :  { %570 = vmatmul.mubr.f32.gmra.mrb[14].mxu0 %v1894_v1  ;;  %1678 = vmatprep.subr.bf16.mxu1 %v1635_v62  ;;  %v444_v62 = vld [vmem:[#allocation6 + $0x568] sm:$0xff] }
  0x88   :  { %731 = vmatmul.mubr.f32.gmra.mrb[14].mxu1 %v1894_v1  ;;  %1638 = vmatpush1.bf16.msra.mxu0 %v1637_v2  ;;  %v1663_v7 = vpack.c.bf16 %v450_v63, %v444_v62 }
  0x89   :  { %1694 = vmatpush1.bf16.msra.mxu1 %v1637_v2  ;;  %575 = vmatprep.mubr.f32.mxu0 %v1898_v5  ;;  %v1661_v2 = vpack.c.bf16 %v437_v58, %v431_v56 }
  0x8a   :  { %736 = vmatprep.mubr.f32.mxu1 %v1898_v5  ;;  %1640 = vmatprep.subr.bf16.mxu0 %v1639_v6 }
  0x8b   :  { %576 = vmatmul.mubr.f32.gmra.mrb[16].mxu0 %v1902_v10  ;;  %1679 = vmatprep.subr.bf16.mxu1 %v1639_v6  ;;  %v268_v6 = vld [vmem:[#allocation3 + $0xe8] sm:$0xff] }
  0x8c   :  { %737 = vmatmul.mubr.f32.gmra.mrb[16].mxu1 %v1902_v10  ;;  %1642 = vmatpush1.bf16.msra.mxu0 %v1641_v11 }
  0x8d   :  { %1695 = vmatpush1.bf16.msra.mxu1 %v1641_v11  ;;  %581 = vmatprep.mubr.f32.mxu0 %v1906_v15  ;;  %v462_v11 = vld [vmem:[#allocation6 + $0x5f8] sm:$0xff] }
  0x8e   :  { %742 = vmatprep.mubr.f32.mxu1 %v1906_v15  ;;  %1644 = vmatprep.subr.bf16.mxu0 %v1643_v18 }
  0x8f   :  { %582 = vmatmul.mubr.f32.gmra.mrb[18].mxu0 %v1910_v22  ;;  %1680 = vmatprep.subr.bf16.mxu1 %v1643_v18  ;;  %v455_v18 = vld [vmem:[#allocation6 + $0x5c0] sm:$0xff] }
  0x90   :  { %743 = vmatmul.mubr.f32.gmra.mrb[18].mxu1 %v1910_v22  ;;  %1646 = vmatpush1.bf16.msra.mxu0 %v1645_v23  ;;  %v1669_v26 = vpack.c.bf16 %v461_v19, %v455_v18 }
  0x91   :  { %1696 = vmatpush1.bf16.msra.mxu1 %v1645_v23  ;;  %587 = vmatprep.mubr.f32.mxu0 %v1914_v27  ;;  %v1667_v23 = vpack.c.bf16 %v462_v11, %v456_v9 }
  0x92   :  { %748 = vmatprep.mubr.f32.mxu1 %v1914_v27  ;;  %1648 = vmatprep.subr.bf16.mxu0 %v1647_v28 }
  0x93   :  { %588 = vmatmul.mubr.f32.gmra.mrb[20].mxu0 %v1918_v32  ;;  %1681 = vmatprep.subr.bf16.mxu1 %v1647_v28 }
  0x94   :  { %749 = vmatmul.mubr.f32.gmra.mrb[20].mxu1 %v1918_v32  ;;  %1650 = vmatpush1.bf16.msra.mxu0 %v1649_v34 }
  0x95   :  { %1697 = vmatpush1.bf16.msra.mxu1 %v1649_v34  ;;  %593 = vmatprep.mubr.f32.mxu0 %v1922_v38 }
  0x96   :  { %754 = vmatprep.mubr.f32.mxu1 %v1922_v38  ;;  %1652 = vmatprep.subr.bf16.mxu0 %v1651_v39 }
  0x97   :  { %594 = vmatmul.mubr.f32.gmra.mrb[22].mxu0 %v1926_v43  ;;  %1682 = vmatprep.subr.bf16.mxu1 %v1651_v39 }
  0x98   :  { %755 = vmatmul.mubr.f32.gmra.mrb[22].mxu1 %v1926_v43  ;;  %1654 = vmatpush1.bf16.msra.mxu0 %v1653_v44 }
  0x99   :  { %1698 = vmatpush1.bf16.msra.mxu1 %v1653_v44  ;;  %599 = vmatprep.mubr.f32.mxu0 %v1930_v48 }
  0x9a   :  { %760 = vmatprep.mubr.f32.mxu1 %v1930_v48  ;;  %1656 = vmatprep.subr.bf16.mxu0 %v1655_v50 }
  0x9b   :  { %600 = vmatmul.mubr.f32.gmra.mrb[24].mxu0 %v1934_v54  ;;  %1683 = vmatprep.subr.bf16.mxu1 %v1655_v50 }
  0x9c   :  { %761 = vmatmul.mubr.f32.gmra.mrb[24].mxu1 %v1934_v54  ;;  %1658 = vmatpush1.bf16.msra.mxu0 %v1657_v55 }
  0x9d   :  { %1699 = vmatpush1.bf16.msra.mxu1 %v1657_v55  ;;  %605 = vmatprep.mubr.f32.mxu0 %v1938_v59 }
  0x9e   :  { %766 = vmatprep.mubr.f32.mxu1 %v1938_v59  ;;  %1660 = vmatprep.subr.bf16.mxu0 %v1659_v60 }
  0x9f   :  { %606 = vmatmul.mubr.f32.gmra.mrb[26].mxu0 %v1942_v0  ;;  %1684 = vmatprep.subr.bf16.mxu1 %v1659_v60 }
  0xa0   :  { %767 = vmatmul.mubr.f32.gmra.mrb[26].mxu1 %v1942_v0  ;;  %1662 = vmatpush1.bf16.msra.mxu0 %v1661_v2 }
  0xa1   :  { %1700 = vmatpush1.bf16.msra.mxu1 %v1661_v2  ;;  %611 = vmatprep.mubr.f32.mxu0 %v268_v6 }
  0xa2   :  { %772 = vmatprep.mubr.f32.mxu1 %v268_v6  ;;  %1664 = vmatprep.subr.bf16.mxu0 %v1663_v7 }
  0xa3   :  { %612 = vmatmul.mubr.f32.gmra.mrb[28].mxu0 %v267_v13  ;;  %1685 = vmatprep.subr.bf16.mxu1 %v1663_v7 }
  0xa4   :  { %773 = vmatmul.mubr.f32.gmra.mrb[28].mxu1 %v267_v13  ;;  %1666 = vmatpush1.bf16.msra.mxu0 %v1665_v14 }
  0xa5   :  { %1701 = vmatpush1.bf16.msra.mxu1 %v1665_v14  ;;  %617 = vmatprep.mubr.f32.mxu0 %v270_v20 }
  0xa6   :  { %778 = vmatprep.mubr.f32.mxu1 %v270_v20  ;;  %1668 = vmatprep.subr.bf16.mxu0 %v1667_v23 }
  0xa7   :  { %618 = vmatmul.mubr.f32.gmra.mrb[30].mxu0 %v269_v24  ;;  %1686 = vmatprep.subr.bf16.mxu1 %v1667_v23 }
  0xa8   :  { %779 = vmatmul.mubr.f32.gmra.mrb[30].mxu1 %v269_v24  ;;  %1670 = vmatpush1.bf16.msra.mxu0 %v1669_v26 }
  0xa9   :  { %1702 = vmatpush1.bf16.msra.mxu1 %v1669_v26  ;;  %849 = vmatprep.mubr.f32.mxu0 %v1836_v16  ;;  %v1239_v16 = vlaneseq }
  0xaa   :  { %897 = vmatprep.mubr.f32.mxu1 %v1898_v5 }
  0xab   :  { %850 = vmatmul.mubr.f32.vlgmr.msra.gmra.mrb[32].mxu0 %v1840_v8  ;;  %v1976_v8 = vshrl.u32 %v1239_v16, 7 }
  0xac   :  { %898 = vmatmul.mubr.f32.vlgmr.msra.gmra.mrb[32].mxu1 %v1902_v10  ;;  %855 = vmatprep.mubr.f32.mxu0 %v1842_v12 }
  0xad   :  { %903 = vmatprep.mubr.f32.mxu1 %v1906_v15  ;;  %v1241_v12 = vsub.s32 0, %v1976_v8 }
  0xaf   :  { %856 = vmatmul.mubr.f32.gmra.mrb[34].mxu0 %v1846_v17  ;;  %v1982_v17 = vld [vmem:[%s2120_s2] sm:$0x3f]  ;;  %s1788_s2 = smov [#allocation8]  }
  0xb0   :  { %904 = vmatmul.mubr.f32.gmra.mrb[34].mxu1 %v1910_v22  ;;  %861 = vmatprep.mubr.f32.mxu0 %v1850_v21  ;;  %v1249_v21 = vsub.s32 2, %v1976_v8  ;;  %s1466_s13 = sshll.u32 %s1788_s2, 4  ;;  %s1467_s13 = int_to_ptr.vmem [resolvable:$true] %s1466_s13 }
  0xb1   :  { %909 = vmatprep.mubr.f32.mxu1 %v1914_v27  ;;  %s1754_s14 = scalar_lea.vmem %s1467_s13, 12288  ;;  %p1759_p3 = scmp.lt.s32.totalorder %s1467_s13, %s1467_s13 }
  0xb2   :  { %p1755_p2 = scmp.ne.s32.totalorder %s1467_s13, %s1754_s14  ;;  %p1760_p4 = scmp.lt.s32.totalorder %s1754_s14, %s1754_s14 }
  0xb3   :  { %862 = vmatmul.mubr.f32.gmra.mrb[36].mxu0 %v1854_v25  ;;  %v1245_v25 = vsub.s32 1, %v1976_v8 }
  0xb4   :  { %910 = vmatmul.mubr.f32.gmra.mrb[36].mxu1 %v1918_v32  ;;  %867 = vmatprep.mubr.f32.mxu0 %v1858_v29  ;;  %v1253_v29 = vsub.s32 3, %v1976_v8  ;;  %p1761_p5 = por %p1760_p4, %p1759_p3 }
  0xb5   :  { %915 = vmatprep.mubr.f32.mxu1 %v1922_v38 }
  0xb6   :  { %p1762_p6 = pnand %p1761_p5, %p1755_p2 }
  0xb7   :  { %868 = vmatmul.mubr.f32.gmra.mrb[38].mxu0 %v1862_v33  ;;  %v1988_v33 = vrot.slane %v1982_v17, %v1241_v12 }
  0xb8   :  { %916 = vmatmul.mubr.f32.gmra.mrb[38].mxu1 %v1926_v43  ;;  %873 = vmatprep.mubr.f32.mxu0 %v1866_v37  ;;  %v1991_v37 = vrot.slane %v1982_v17, %v1249_v21 }
  0xb9   :  { %921 = vmatprep.mubr.f32.mxu1 %v1930_v48 }
  0xbb   :  { %874 = vmatmul.mubr.f32.gmra.mrb[40].mxu0 %v1870_v41  ;;  %v1994_v41 = vrot.slane %v1982_v17, %v1245_v25 }
  0xbc   :  { %922 = vmatmul.mubr.f32.gmra.mrb[40].mxu1 %v1934_v54  ;;  %879 = vmatprep.mubr.f32.mxu0 %v1874_v45  ;;  %v1997_v45 = vrot.slane %v1982_v17, %v1253_v29 }
  0xbd   :  { %927 = vmatprep.mubr.f32.mxu1 %v1938_v59 }
  0xbf   :  { %880 = vmatmul.mubr.f32.gmra.mrb[42].mxu0 %v1878_v49 }
  0xc0   :  { %928 = vmatmul.mubr.f32.gmra.mrb[42].mxu1 %v1942_v0  ;;  %885 = vmatprep.mubr.f32.mxu0 %v1882_v53 }
  0xc1   :  { %933 = vmatprep.mubr.f32.mxu1 %v268_v6 }
  0xc3   :  { %886 = vmatmul.mubr.f32.gmra.mrb[44].mxu0 %v1886_v57 }
  0xc4   :  { %934 = vmatmul.mubr.f32.gmra.mrb[44].mxu1 %v267_v13  ;;  %891 = vmatprep.mubr.f32.mxu0 %v1890_v61 }
  0xc5   :  { %939 = vmatprep.mubr.f32.mxu1 %v270_v20 }
  0xc7   :  { %892 = vmatmul.mubr.f32.gmra.mrb[46].mxu0 %v1894_v1 }
  0xc8   :  { %940 = vmatmul.mubr.f32.gmra.mrb[46].mxu1 %v269_v24 }
 0x13e   :  { %v529_v49 = vpop.f32.mrb[0].mxu0 }
 0x13f   :  { %v1269_v53 = vadd.f32 %v1988_v33, %v529_v49  ;;  %v690_v57 = vpop.f32.mrb[0].mxu1  ;;  %v531_v61 = vpop.f32.mrb[1].mxu0 }
 0x140   :  { %v1271_v1 = vadd.f32 %v1991_v37, %v690_v57  ;;  %v1270_v5 = vadd.f32 %v1994_v41, %v531_v61  ;;  %v692_v10 = vpop.f32.mrb[1].mxu1 }
 0x141   :  { %1365 = vst [vmem:[#allocation8] sm:$0xff] %v1269_v53  ;;  %v1272_v15 = vadd.f32 %v1997_v45, %v692_v10 }
 0x142   :  { %1367 = vst [vmem:[#allocation8 + $0x10] sm:$0xff] %v1271_v1  ;;  %1366 = vst [vmem:[#allocation8 + $0x8] sm:$0xff] %v1270_v5  ;;  %v535_v22 = vpop.f32.mrb[2].mxu0 }
 0x143   :  { %1368 = vst [vmem:[#allocation8 + $0x18] sm:$0xff] %v1272_v15  ;;  %v1275_v27 = vadd.f32 %v1988_v33, %v535_v22  ;;  %v696_v28 = vpop.f32.mrb[2].mxu1  ;;  %v537_v30 = vpop.f32.mrb[3].mxu0 }
 0x144   :  { %v1277_v31 = vadd.f32 %v1991_v37, %v696_v28  ;;  %v1276_v32 = vadd.f32 %v1994_v41, %v537_v30  ;;  %v698_v34 = vpop.f32.mrb[3].mxu1 }
 0x145   :  { %1371 = vst [vmem:[#allocation8 + $0x30] sm:$0xff] %v1275_v27  ;;  %v1278_v35 = vadd.f32 %v1997_v45, %v698_v34 }
 0x146   :  { %1373 = vst [vmem:[#allocation8 + $0x40] sm:$0xff] %v1277_v31  ;;  %1372 = vst [vmem:[#allocation8 + $0x38] sm:$0xff] %v1276_v32  ;;  %v541_v36 = vpop.f32.mrb[4].mxu0 }
 0x147   :  { %1374 = vst [vmem:[#allocation8 + $0x48] sm:$0xff] %v1278_v35  ;;  %v1281_v38 = vadd.f32 %v1988_v33, %v541_v36  ;;  %v702_v39 = vpop.f32.mrb[4].mxu1  ;;  %v543_v40 = vpop.f32.mrb[5].mxu0 }
 0x148   :  { %v1283_v42 = vadd.f32 %v1991_v37, %v702_v39  ;;  %v1282_v43 = vadd.f32 %v1994_v41, %v543_v40  ;;  %v704_v44 = vpop.f32.mrb[5].mxu1 }
 0x149   :  { %1377 = vst [vmem:[#allocation8 + $0x60] sm:$0xff] %v1281_v38  ;;  %v1284_v46 = vadd.f32 %v1997_v45, %v704_v44 }
 0x14a   :  { %1379 = vst [vmem:[#allocation8 + $0x70] sm:$0xff] %v1283_v42  ;;  %1378 = vst [vmem:[#allocation8 + $0x68] sm:$0xff] %v1282_v43  ;;  %v547_v47 = vpop.f32.mrb[6].mxu0 }
 0x14b   :  { %1380 = vst [vmem:[#allocation8 + $0x78] sm:$0xff] %v1284_v46  ;;  %v1287_v48 = vadd.f32 %v1988_v33, %v547_v47  ;;  %v708_v50 = vpop.f32.mrb[6].mxu1  ;;  %v549_v51 = vpop.f32.mrb[7].mxu0 }
 0x14c   :  { %v1289_v52 = vadd.f32 %v1991_v37, %v708_v50  ;;  %v1288_v54 = vadd.f32 %v1994_v41, %v549_v51  ;;  %v710_v55 = vpop.f32.mrb[7].mxu1 }
 0x14d   :  { %1383 = vst [vmem:[#allocation8 + $0x90] sm:$0xff] %v1287_v48  ;;  %v1290_v56 = vadd.f32 %v1997_v45, %v710_v55 }
 0x14e   :  { %1385 = vst [vmem:[#allocation8 + $0xa0] sm:$0xff] %v1289_v52  ;;  %1384 = vst [vmem:[#allocation8 + $0x98] sm:$0xff] %v1288_v54  ;;  %v553_v58 = vpop.f32.mrb[8].mxu0 }
 0x14f   :  { %1386 = vst [vmem:[#allocation8 + $0xa8] sm:$0xff] %v1290_v56  ;;  %v1293_v59 = vadd.f32 %v1988_v33, %v553_v58  ;;  %v714_v60 = vpop.f32.mrb[8].mxu1  ;;  %v555_v62 = vpop.f32.mrb[9].mxu0 }
 0x150   :  { %v1295_v63 = vadd.f32 %v1991_v37, %v714_v60  ;;  %v1294_v0 = vadd.f32 %v1994_v41, %v555_v62  ;;  %v716_v2 = vpop.f32.mrb[9].mxu1 }
 0x151   :  { %1389 = vst [vmem:[#allocation8 + $0xc0] sm:$0xff] %v1293_v59  ;;  %v1296_v3 = vadd.f32 %v1997_v45, %v716_v2 }
 0x152   :  { %1391 = vst [vmem:[#allocation8 + $0xd0] sm:$0xff] %v1295_v63  ;;  %1390 = vst [vmem:[#allocation8 + $0xc8] sm:$0xff] %v1294_v0  ;;  %v559_v4 = vpop.f32.mrb[10].mxu0 }
 0x153   :  { %1392 = vst [vmem:[#allocation8 + $0xd8] sm:$0xff] %v1296_v3  ;;  %v1299_v6 = vadd.f32 %v1988_v33, %v559_v4  ;;  %v720_v7 = vpop.f32.mrb[10].mxu1  ;;  %v561_v9 = vpop.f32.mrb[11].mxu0 }
 0x154   :  { %v1301_v11 = vadd.f32 %v1991_v37, %v720_v7  ;;  %v1300_v13 = vadd.f32 %v1994_v41, %v561_v9  ;;  %v722_v14 = vpop.f32.mrb[11].mxu1 }
 0x155   :  { %1395 = vst [vmem:[#allocation8 + $0xf0] sm:$0xff] %v1299_v6  ;;  %v1302_v18 = vadd.f32 %v1997_v45, %v722_v14 }
 0x156   :  { %1397 = vst [vmem:[#allocation8 + $0x100] sm:$0xff] %v1301_v11  ;;  %1396 = vst [vmem:[#allocation8 + $0xf8] sm:$0xff] %v1300_v13  ;;  %v565_v19 = vpop.f32.mrb[12].mxu0 }
 0x157   :  { %1398 = vst [vmem:[#allocation8 + $0x108] sm:$0xff] %v1302_v18  ;;  %v1305_v20 = vadd.f32 %v1988_v33, %v565_v19  ;;  %v726_v23 = vpop.f32.mrb[12].mxu1  ;;  %v567_v24 = vpop.f32.mrb[13].mxu0 }
 0x158   :  { %v1307_v26 = vadd.f32 %v1991_v37, %v726_v23  ;;  %v1306_v16 = vadd.f32 %v1994_v41, %v567_v24  ;;  %v728_v12 = vpop.f32.mrb[13].mxu1 }
 0x159   :  { %1401 = vst [vmem:[#allocation8 + $0x120] sm:$0xff] %v1305_v20  ;;  %v1308_v21 = vadd.f32 %v1997_v45, %v728_v12 }
 0x15a   :  { %1403 = vst [vmem:[#allocation8 + $0x130] sm:$0xff] %v1307_v26  ;;  %1402 = vst [vmem:[#allocation8 + $0x128] sm:$0xff] %v1306_v16  ;;  %v571_v25 = vpop.f32.mrb[14].mxu0 }
 0x15b   :  { %1404 = vst [vmem:[#allocation8 + $0x138] sm:$0xff] %v1308_v21  ;;  %v1311_v29 = vadd.f32 %v1988_v33, %v571_v25  ;;  %v732_v49 = vpop.f32.mrb[14].mxu1  ;;  %v573_v53 = vpop.f32.mrb[15].mxu0 }
 0x15c   :  { %v1313_v57 = vadd.f32 %v1991_v37, %v732_v49  ;;  %v1312_v61 = vadd.f32 %v1994_v41, %v573_v53  ;;  %v734_v1 = vpop.f32.mrb[15].mxu1  ;;  %v1257_v49 = vsub.s32 4, %v1976_v8 }
 0x15d   :  { %1407 = vst [vmem:[#allocation8 + $0x150] sm:$0xff] %v1311_v29  ;;  %v1314_v5 = vadd.f32 %v1997_v45, %v734_v1  ;;  %v1261_v1 = vsub.s32 5, %v1976_v8 }
 0x15e   :  { %1409 = vst [vmem:[#allocation8 + $0x160] sm:$0xff] %v1313_v57  ;;  %1408 = vst [vmem:[#allocation8 + $0x158] sm:$0xff] %v1312_v61  ;;  %v577_v10 = vpop.f32.mrb[16].mxu0 }
 0x15f   :  { %1410 = vst [vmem:[#allocation8 + $0x168] sm:$0xff] %v1314_v5  ;;  %v1317_v15 = vadd.f32 %v1988_v33, %v577_v10  ;;  %v738_v22 = vpop.f32.mrb[16].mxu1  ;;  %v579_v27 = vpop.f32.mrb[17].mxu0  ;;  %v2068_v8 = vrot.slane %v1982_v17, %v1261_v1 }
 0x160   :  { %v1319_v28 = vadd.f32 %v1991_v37, %v738_v22  ;;  %v1318_v30 = vadd.f32 %v1994_v41, %v579_v27  ;;  %v740_v31 = vpop.f32.mrb[17].mxu1 }
 0x161   :  { %1413 = vst [vmem:[#allocation8 + $0x180] sm:$0xff] %v1317_v15  ;;  %v1320_v32 = vadd.f32 %v1997_v45, %v740_v31 }
 0x162   :  { %1415 = vst [vmem:[#allocation8 + $0x190] sm:$0xff] %v1319_v28  ;;  %1414 = vst [vmem:[#allocation8 + $0x188] sm:$0xff] %v1318_v30  ;;  %v583_v34 = vpop.f32.mrb[18].mxu0  ;;  %v2063_v28 = vrot.slane %v1982_v17, %v1257_v49 }
 0x163   :  { %1416 = vst [vmem:[#allocation8 + $0x198] sm:$0xff] %v1320_v32  ;;  %v1323_v35 = vadd.f32 %v1988_v33, %v583_v34  ;;  %v744_v36 = vpop.f32.mrb[18].mxu1  ;;  %v585_v38 = vpop.f32.mrb[19].mxu0 }
 0x164   :  { %v1325_v39 = vadd.f32 %v1991_v37, %v744_v36  ;;  %v1324_v40 = vadd.f32 %v1994_v41, %v585_v38  ;;  %v746_v42 = vpop.f32.mrb[19].mxu1 }
 0x165   :  { %1419 = vst [vmem:[#allocation8 + $0x1b0] sm:$0xff] %v1323_v35  ;;  %v1326_v43 = vadd.f32 %v1997_v45, %v746_v42 }
 0x166   :  { %1421 = vst [vmem:[#allocation8 + $0x1c0] sm:$0xff] %v1325_v39  ;;  %1420 = vst [vmem:[#allocation8 + $0x1b8] sm:$0xff] %v1324_v40  ;;  %v589_v44 = vpop.f32.mrb[20].mxu0 }
 0x167   :  { %1422 = vst [vmem:[#allocation8 + $0x1c8] sm:$0xff] %v1326_v43  ;;  %v1329_v46 = vadd.f32 %v1988_v33, %v589_v44  ;;  %v750_v47 = vpop.f32.mrb[20].mxu1  ;;  %v591_v48 = vpop.f32.mrb[21].mxu0 }
 0x168   :  { %v1331_v50 = vadd.f32 %v1991_v37, %v750_v47  ;;  %v1330_v51 = vadd.f32 %v1994_v41, %v591_v48  ;;  %v752_v52 = vpop.f32.mrb[21].mxu1 }
 0x169   :  { %1425 = vst [vmem:[#allocation8 + $0x1e0] sm:$0xff] %v1329_v46  ;;  %v1332_v54 = vadd.f32 %v1997_v45, %v752_v52 }
 0x16a   :  { %1427 = vst [vmem:[#allocation8 + $0x1f0] sm:$0xff] %v1331_v50  ;;  %1426 = vst [vmem:[#allocation8 + $0x1e8] sm:$0xff] %v1330_v51  ;;  %v595_v55 = vpop.f32.mrb[22].mxu0 }
 0x16b   :  { %1428 = vst [vmem:[#allocation8 + $0x1f8] sm:$0xff] %v1332_v54  ;;  %v1335_v56 = vadd.f32 %v1988_v33, %v595_v55  ;;  %v756_v58 = vpop.f32.mrb[22].mxu1  ;;  %v597_v59 = vpop.f32.mrb[23].mxu0 }
 0x16c   :  { %v1337_v60 = vadd.f32 %v1991_v37, %v756_v58  ;;  %v1336_v62 = vadd.f32 %v1994_v41, %v597_v59  ;;  %v758_v63 = vpop.f32.mrb[23].mxu1 }
 0x16d   :  { %1431 = vst [vmem:[#allocation8 + $0x210] sm:$0xff] %v1335_v56  ;;  %v1338_v0 = vadd.f32 %v1997_v45, %v758_v63 }
 0x16e   :  { %1433 = vst [vmem:[#allocation8 + $0x220] sm:$0xff] %v1337_v60  ;;  %1432 = vst [vmem:[#allocation8 + $0x218] sm:$0xff] %v1336_v62  ;;  %v601_v2 = vpop.f32.mrb[24].mxu0 }
 0x16f   :  { %1434 = vst [vmem:[#allocation8 + $0x228] sm:$0xff] %v1338_v0  ;;  %v1341_v3 = vadd.f32 %v1988_v33, %v601_v2  ;;  %v762_v4 = vpop.f32.mrb[24].mxu1  ;;  %v603_v6 = vpop.f32.mrb[25].mxu0 }
 0x170   :  { %v1343_v7 = vadd.f32 %v1991_v37, %v762_v4  ;;  %v1342_v9 = vadd.f32 %v1994_v41, %v603_v6  ;;  %v764_v11 = vpop.f32.mrb[25].mxu1 }
 0x171   :  { %1437 = vst [vmem:[#allocation8 + $0x240] sm:$0xff] %v1341_v3  ;;  %v1344_v13 = vadd.f32 %v1997_v45, %v764_v11 }
 0x172   :  { %1439 = vst [vmem:[#allocation8 + $0x250] sm:$0xff] %v1343_v7  ;;  %1438 = vst [vmem:[#allocation8 + $0x248] sm:$0xff] %v1342_v9  ;;  %v607_v14 = vpop.f32.mrb[26].mxu0 }
 0x173   :  { %1440 = vst [vmem:[#allocation8 + $0x258] sm:$0xff] %v1344_v13  ;;  %v1347_v18 = vadd.f32 %v1988_v33, %v607_v14  ;;  %v768_v19 = vpop.f32.mrb[26].mxu1  ;;  %v609_v20 = vpop.f32.mrb[27].mxu0 }
 0x174   :  { %v1349_v23 = vadd.f32 %v1991_v37, %v768_v19  ;;  %v1348_v24 = vadd.f32 %v1994_v41, %v609_v20  ;;  %v770_v26 = vpop.f32.mrb[27].mxu1 }
 0x175   :  { %1443 = vst [vmem:[#allocation8 + $0x270] sm:$0xff] %v1347_v18  ;;  %v1350_v16 = vadd.f32 %v1997_v45, %v770_v26 }
 0x176   :  { %1445 = vst [vmem:[#allocation8 + $0x280] sm:$0xff] %v1349_v23  ;;  %1444 = vst [vmem:[#allocation8 + $0x278] sm:$0xff] %v1348_v24  ;;  %v613_v12 = vpop.f32.mrb[28].mxu0 }
 0x177   :  { %1446 = vst [vmem:[#allocation8 + $0x288] sm:$0xff] %v1350_v16  ;;  %v1353_v21 = vadd.f32 %v1988_v33, %v613_v12  ;;  %v774_v25 = vpop.f32.mrb[28].mxu1  ;;  %v615_v29 = vpop.f32.mrb[29].mxu0 }
 0x178   :  { %v1355_v53 = vadd.f32 %v1991_v37, %v774_v25  ;;  %v1354_v57 = vadd.f32 %v1994_v41, %v615_v29  ;;  %v776_v61 = vpop.f32.mrb[29].mxu1 }
 0x179   :  { %1449 = vst [vmem:[#allocation8 + $0x2a0] sm:$0xff] %v1353_v21  ;;  %v1356_v5 = vadd.f32 %v1997_v45, %v776_v61 }
 0x17a   :  { %1451 = vst [vmem:[#allocation8 + $0x2b0] sm:$0xff] %v1355_v53  ;;  %1450 = vst [vmem:[#allocation8 + $0x2a8] sm:$0xff] %v1354_v57  ;;  %v619_v10 = vpop.f32.mrb[30].mxu0 }
 0x17b   :  { %1452 = vst [vmem:[#allocation8 + $0x2b8] sm:$0xff] %v1356_v5  ;;  %v1359_v15 = vadd.f32 %v1988_v33, %v619_v10  ;;  %v780_v22 = vpop.f32.mrb[30].mxu1  ;;  %v621_v27 = vpop.f32.mrb[31].mxu0 }
 0x17c   :  { %v1361_v30 = vadd.f32 %v1991_v37, %v780_v22  ;;  %v1360_v31 = vadd.f32 %v1994_v41, %v621_v27  ;;  %v782_v32 = vpop.f32.mrb[31].mxu1 }
 0x17d   :  { %1455 = vst [vmem:[#allocation8 + $0x2d0] sm:$0xff] %v1359_v15  ;;  %v1362_v34 = vadd.f32 %v1997_v45, %v782_v32 }
 0x17e   :  { %1457 = vst [vmem:[#allocation8 + $0x2e0] sm:$0xff] %v1361_v30  ;;  %1456 = vst [vmem:[#allocation8 + $0x2d8] sm:$0xff] %v1360_v31  ;;  %v851_v35 = vpop.f32.mrb[32].mxu0 }
 0x17f   :  { %1458 = vst [vmem:[#allocation8 + $0x2e8] sm:$0xff] %v1362_v34  ;;  %v1273_v33 = vadd.f32 %v2063_v28, %v851_v35  ;;  %v899_v36 = vpop.f32.mrb[32].mxu1  ;;  %v853_v38 = vpop.f32.mrb[33].mxu0 }
 0x180   :  { %v1321_v39 = vadd.f32 %v2063_v28, %v899_v36  ;;  %v1274_v37 = vadd.f32 %v2068_v8, %v853_v38  ;;  %v901_v41 = vpop.f32.mrb[33].mxu1 }
 0x181   :  { %1369 = vst [vmem:[#allocation8 + $0x20] sm:$0xff] %v1273_v33  ;;  %v1322_v17 = vadd.f32 %v2068_v8, %v901_v41 }
 0x182   :  { %1417 = vst [vmem:[#allocation8 + $0x1a0] sm:$0xff] %v1321_v39  ;;  %1370 = vst [vmem:[#allocation8 + $0x28] sm:$0xff] %v1274_v37  ;;  %v857_v40 = vpop.f32.mrb[34].mxu0 }
 0x183   :  { %1418 = vst [vmem:[#allocation8 + $0x1a8] sm:$0xff] %v1322_v17  ;;  %v1279_v45 = vadd.f32 %v2063_v28, %v857_v40  ;;  %v905_v42 = vpop.f32.mrb[34].mxu1  ;;  %v859_v43 = vpop.f32.mrb[35].mxu0 }
 0x184   :  { %v1327_v44 = vadd.f32 %v2063_v28, %v905_v42  ;;  %v1280_v46 = vadd.f32 %v2068_v8, %v859_v43  ;;  %v907_v47 = vpop.f32.mrb[35].mxu1 }
 0x185   :  { %1375 = vst [vmem:[#allocation8 + $0x50] sm:$0xff] %v1279_v45  ;;  %v1328_v48 = vadd.f32 %v2068_v8, %v907_v47 }
 0x186   :  { %1423 = vst [vmem:[#allocation8 + $0x1d0] sm:$0xff] %v1327_v44  ;;  %1376 = vst [vmem:[#allocation8 + $0x58] sm:$0xff] %v1280_v46  ;;  %v863_v50 = vpop.f32.mrb[36].mxu0 }
 0x187   :  { %1424 = vst [vmem:[#allocation8 + $0x1d8] sm:$0xff] %v1328_v48  ;;  %v1285_v51 = vadd.f32 %v2063_v28, %v863_v50  ;;  %v911_v52 = vpop.f32.mrb[36].mxu1  ;;  %v865_v54 = vpop.f32.mrb[37].mxu0 }
 0x188   :  { %v1333_v55 = vadd.f32 %v2063_v28, %v911_v52  ;;  %v1286_v56 = vadd.f32 %v2068_v8, %v865_v54  ;;  %v913_v58 = vpop.f32.mrb[37].mxu1 }
 0x189   :  { %1381 = vst [vmem:[#allocation8 + $0x80] sm:$0xff] %v1285_v51  ;;  %v1334_v59 = vadd.f32 %v2068_v8, %v913_v58 }
 0x18a   :  { %1429 = vst [vmem:[#allocation8 + $0x200] sm:$0xff] %v1333_v55  ;;  %1382 = vst [vmem:[#allocation8 + $0x88] sm:$0xff] %v1286_v56  ;;  %v869_v60 = vpop.f32.mrb[38].mxu0 }
 0x18b   :  { %1430 = vst [vmem:[#allocation8 + $0x208] sm:$0xff] %v1334_v59  ;;  %v1291_v62 = vadd.f32 %v2063_v28, %v869_v60  ;;  %v917_v63 = vpop.f32.mrb[38].mxu1  ;;  %v871_v0 = vpop.f32.mrb[39].mxu0 }
 0x18c   :  { %v1339_v2 = vadd.f32 %v2063_v28, %v917_v63  ;;  %v1292_v3 = vadd.f32 %v2068_v8, %v871_v0  ;;  %v919_v4 = vpop.f32.mrb[39].mxu1 }
 0x18d   :  { %1387 = vst [vmem:[#allocation8 + $0xb0] sm:$0xff] %v1291_v62  ;;  %v1340_v6 = vadd.f32 %v2068_v8, %v919_v4 }
 0x18e   :  { %1435 = vst [vmem:[#allocation8 + $0x230] sm:$0xff] %v1339_v2  ;;  %1388 = vst [vmem:[#allocation8 + $0xb8] sm:$0xff] %v1292_v3  ;;  %v875_v7 = vpop.f32.mrb[40].mxu0 }
 0x18f   :  { %1436 = vst [vmem:[#allocation8 + $0x238] sm:$0xff] %v1340_v6  ;;  %v1297_v9 = vadd.f32 %v2063_v28, %v875_v7  ;;  %v923_v11 = vpop.f32.mrb[40].mxu1  ;;  %v877_v13 = vpop.f32.mrb[41].mxu0 }
 0x190   :  { %v1345_v14 = vadd.f32 %v2063_v28, %v923_v11  ;;  %v1298_v18 = vadd.f32 %v2068_v8, %v877_v13  ;;  %v925_v19 = vpop.f32.mrb[41].mxu1 }
 0x191   :  { %1393 = vst [vmem:[#allocation8 + $0xe0] sm:$0xff] %v1297_v9  ;;  %v1346_v20 = vadd.f32 %v2068_v8, %v925_v19 }
 0x192   :  { %1441 = vst [vmem:[#allocation8 + $0x260] sm:$0xff] %v1345_v14  ;;  %1394 = vst [vmem:[#allocation8 + $0xe8] sm:$0xff] %v1298_v18  ;;  %v881_v23 = vpop.f32.mrb[42].mxu0 }
 0x193   :  { %1442 = vst [vmem:[#allocation8 + $0x268] sm:$0xff] %v1346_v20  ;;  %v1303_v24 = vadd.f32 %v2063_v28, %v881_v23  ;;  %v929_v26 = vpop.f32.mrb[42].mxu1  ;;  %v883_v16 = vpop.f32.mrb[43].mxu0 }
 0x194   :  { %v1351_v12 = vadd.f32 %v2063_v28, %v929_v26  ;;  %v1304_v21 = vadd.f32 %v2068_v8, %v883_v16  ;;  %v931_v25 = vpop.f32.mrb[43].mxu1 }
 0x195   :  { %1399 = vst [vmem:[#allocation8 + $0x110] sm:$0xff] %v1303_v24  ;;  %v1352_v29 = vadd.f32 %v2068_v8, %v931_v25 }
 0x196   :  { %1447 = vst [vmem:[#allocation8 + $0x290] sm:$0xff] %v1351_v12  ;;  %1400 = vst [vmem:[#allocation8 + $0x118] sm:$0xff] %v1304_v21  ;;  %v887_v49 = vpop.f32.mrb[44].mxu0 }
 0x197   :  { %1448 = vst [vmem:[#allocation8 + $0x298] sm:$0xff] %v1352_v29  ;;  %v1309_v53 = vadd.f32 %v2063_v28, %v887_v49  ;;  %v935_v57 = vpop.f32.mrb[44].mxu1  ;;  %v889_v61 = vpop.f32.mrb[45].mxu0 }
 0x198   :  { %v1357_v1 = vadd.f32 %v2063_v28, %v935_v57  ;;  %v1310_v5 = vadd.f32 %v2068_v8, %v889_v61  ;;  %v937_v10 = vpop.f32.mrb[45].mxu1 }
 0x199   :  { %1405 = vst [vmem:[#allocation8 + $0x140] sm:$0xff] %v1309_v53  ;;  %v1358_v15 = vadd.f32 %v2068_v8, %v937_v10 }
 0x19a   :  { %1453 = vst [vmem:[#allocation8 + $0x2c0] sm:$0xff] %v1357_v1  ;;  %1406 = vst [vmem:[#allocation8 + $0x148] sm:$0xff] %v1310_v5  ;;  %v893_v22 = vpop.f32.mrb[46].mxu0 }
 0x19b   :  { %1454 = vst [vmem:[#allocation8 + $0x2c8] sm:$0xff] %v1358_v15  ;;  %v1315_v27 = vadd.f32 %v2063_v28, %v893_v22  ;;  %v941_v30 = vpop.f32.mrb[46].mxu1  ;;  %v895_v31 = vpop.f32.mrb[47].mxu0 }
 0x19c   :  { %v1363_v32 = vadd.f32 %v2063_v28, %v941_v30  ;;  %v1316_v34 = vadd.f32 %v2068_v8, %v895_v31  ;;  %v943_v35 = vpop.f32.mrb[47].mxu1 }
 0x19d   :  { %1411 = vst [vmem:[#allocation8 + $0x170] sm:$0xff] %v1315_v27  ;;  %v1364_v33 = vadd.f32 %v2068_v8, %v943_v35 }
 0x19e   :  { %1459 = vst [vmem:[#allocation8 + $0x2f0] sm:$0xff] %v1363_v32  ;;  %1412 = vst [vmem:[#allocation8 + $0x178] sm:$0xff] %v1316_v34 }
 0x19f   :  { %1460 = vst [vmem:[#allocation8 + $0x2f8] sm:$0xff] %v1364_v33 }
 0x1a0   :  { %1765 = shalt.err (!%p1762_p6)
}
 0x1a1   :  { %s1766_s17 = scalar_lea.hbm %s2121_s3, 12288 }
 0x1a2   :  { %p1767_p7 = scmp.ne.s32.totalorder %s2121_s3, %s1766_s17  ;;  %p1770_p8 = scmp.lt.u32.totalorder %s1766_s17, %s2121_s3 }
 0x1a4   :  { %p1772_p9 = pnand %p1770_p8, %p1767_p7 }
 0x1a6   :  { %1775 = shalt.err (!%p1772_p9)
}
 0x1a7   :  { %1472 = dma.vmem_to_hbm [thread:$0]  %s1467_s13, 12288, %s2121_s3, [#allocation5], %s1786_s0, %s1786_s0, %s1787_s9  }
 0x1a8   :  { %1780 = dma.done.wait [#allocation5], 12288  }
 0x1a9   :  { %1781 = vsyncadd [#allocation5], 4294955008 }
 0x1aa   :  { %1476 = vsyncpa [#allocation4], 1 }
 0x1ab   :  { %1477 = vsyncpa [#allocation7], 1 }
 0x1ac   :  { %1478 = vsyncpa [#allocation5], 1 }

</bundles_post_ra>
